<compile_context>
chip_gen: v7x
topology: tpu7x:2x2x1
jax: 0.10.0
libtpu: 0.0.40
codegen_flags: <defaults>
</compile_context>

<pallas_src>
import numpy as np
import jax
import jax.numpy as jnp
from jax.experimental import pallas as pl
from jax.experimental.pallas import tpu as pltpu

BN_EPS = 1e-5
LANE = 128


# ----------------------------- constant preparation -------------------------- #

def _bn_fold(bn, eps=BN_EPS):
    gamma, beta, mean, var = bn
    scale = gamma / jnp.sqrt(var + eps)
    return scale, beta - mean * scale


def _stage1_rhs(conv_w, scale, w_out, w_in, stride, pad, k=3):
    """Fused-K RHS for the full 3x3 conv in (H, W*Cin) layout.

    Rows ordered [ky=0 | ky=1 | ky=2] (each w_in*Cin wide) to match the
    lane-concatenated LHS built in the kernel.  BN scale folded in.
    Returns (k*w_in*Cin, w_out*Cout)."""
    sel = np.zeros((k, w_in, w_out), np.float32)
    for kx in range(k):
        for ow in range(w_out):
            iw = stride * ow + kx - pad
            if 0 <= iw < w_in:
                sel[kx, iw, ow] = 1.0
    wm = jnp.transpose(conv_w, (2, 3, 1, 0)) * scale[None, None, None, :]  # (ky,kx,ci,d)
    g = jnp.einsum('xio,yxcd->yicod', jnp.asarray(sel), wm)
    cin, cout = conv_w.shape[1], conv_w.shape[0]
    return g.reshape(k * w_in * cin, w_out * cout)


def _col_select_cat(w_out, w_in, c, stride, pad, k=3):
    """Fused-K 0/1 column-selection (W stride + padding), rows ordered
    [kx=0 | kx=1 | kx=2].  Exact in bf16.  Returns (k*w_in*c, w_out*c)."""
    eye = np.eye(c, dtype=np.float32)
    blocks = []
    for kx in range(k):
        sel = np.zeros((w_in, w_out), np.float32)
        for ow in range(w_out):
            iw = stride * ow + kx - pad
            if 0 <= iw < w_in:
                sel[iw, ow] = 1.0
        blocks.append(np.kron(sel, eye))
    return jnp.asarray(np.concatenate(blocks, axis=0))


def _dw_rows(dw_w, scale, w_in):
    """Depthwise weights tiled across width, BN scale folded.
    (9, w_in*C), row index = 3*ky + kx."""
    c = dw_w.shape[0]
    w = jnp.transpose(dw_w[:, 0], (1, 2, 0)) * scale[None, None, :]   # (ky,kx,C)
    w = jnp.tile(w, (1, 1, w_in))                                     # (ky,kx,w_in*C)
    return w.reshape(9, w_in * c)


def _pw_blockdiag(pw_w, scale, w_out):
    """1x1 conv as a block-diagonal matrix in (H, W*C) layout, BN scale folded."""
    wp = jnp.transpose(pw_w[:, :, 0, 0], (1, 0)) * scale[None, :]     # (Cin, Cout)
    return jnp.kron(jnp.eye(w_out, dtype=wp.dtype), wp)


def _tile_shift(shift, w_out):
    return jnp.tile(shift, w_out)[None, :]


def _pack_rows(mats, row_align, dtype):
    """Stack 2-D mats into a single (rows, 128) slab (one DMA).
    Returns (slab, [(row_offset, true_rows, true_cols), ...])."""
    padded, segs, off = [], [], 0
    for m in mats:
        r, c = m.shape
        assert c <= LANE
        rp = -(-r // row_align) * row_align
        padded.append(jnp.pad(m.astype(jnp.float32), ((0, rp - r), (0, LANE - c))))
        segs.append((off, r, c))
        off += rp
    return jnp.concatenate(padded, axis=0).astype(dtype), segs


def prepare_ltd(params, in_shape):
    """One-time constant folding (BN fold, fused-K RHS, packing).  Call once
    when params are loaded; the per-forward wrapper only reshapes the input."""
    cin, h, w = in_shape
    assert h % 2 == 0, "pair-row layout needs even H"

    c1 = params['conv_w'].shape[0]
    c2 = params['pw1_w'].shape[0]
    c3 = params['pw2_w'].shape[0]

    ho1, wo1 = (h - 3) // 2 + 1, (w - 3) // 2 + 1          # conv    k3 s2 p0
    ho2, wo2 = (ho1 - 1) // 2 + 1, (wo1 - 1) // 2 + 1      # dsconv1 k3 s2 p1
    ho3, wo3 = (ho2 - 1) // 2 + 1, (wo2 - 1) // 2 + 1      # dsconv2 k3 s2 p1

    sc1, sh1 = _bn_fold(params['bn1'])
    dsc1, dsh1 = _bn_fold(params['dw1_bn'])
    psc1, psh1 = _bn_fold(params['pw1_bn'])
    dsc2, dsh2 = _bn_fold(params['dw2_bn'])
    psc2, psh2 = _bn_fold(params['pw2_bn'])

    # bf16 MXU slab: fused-K conv RHS, fused-K col-selects, pw block-diagonals.
    wslab, wseg_list = _pack_rows(
        [_stage1_rhs(params['conv_w'], sc1, wo1, w, 2, 0),
         _col_select_cat(wo2, wo1, c1, 2, 1),
         _pw_blockdiag(params['pw1_w'], psc1, wo2),
         _col_select_cat(wo3, wo2, c2, 2, 1),
         _pw_blockdiag(params['pw2_w'], psc2, wo3)],
        row_align=16, dtype=jnp.bfloat16)
    wsegs = dict(zip(('g1', 'col2', 'pw2', 'col3', 'pw3'), wseg_list))

    # f32 VPU slab: depthwise tap rows + the five BN shift rows.
    cslab, cseg_list = _pack_rows(
        [_dw_rows(params['dw1_w'], dsc1, wo1),
         _dw_rows(params['dw2_w'], dsc2, wo2),
         _tile_shift(sh1, wo1),
         _tile_shift(dsh1, wo2),
         _tile_shift(psh1, wo2),
         _tile_shift(dsh2, wo3),
         _tile_shift(psh2, wo3)],
        row_align=8, dtype=jnp.float32)
    csegs = dict(zip(('dw1', 'dw2', 'sh1', 'dsh1', 'psh1', 'dsh2', 'psh2'),
                     cseg_list))

    cfg = dict(cin=cin, h=h, w=w, c1=c1, c2=c2, c3=c3,
               ho1=ho1, wo1=wo1, ho2=ho2, wo2=wo2, ho3=ho3, wo3=wo3,
               wsegs=wsegs, csegs=csegs)
    return wslab, cslab, cfg


# --------------------------------- kernel ----------------------------------- #

def _make_ltd_kernel(cfg, b_tile):
    bt = b_tile
    f32, bf16 = jnp.float32, jnp.bfloat16
    wsegs, csegs = cfg['wsegs'], cfg['csegs']

    wcin = cfg['w'] * cfg['cin']
    ho1 = cfg['ho1']
    w1c = cfg['wo1'] * cfg['c1']
    ho2 = cfg['ho2']
    w2c2 = cfg['wo2'] * cfg['c2']
    ho3 = cfg['ho3']
    w3c3 = cfg['wo3'] * cfg['c3']
    r2 = 2 * ho2 + 1                      # padded rows per image (dsconv1)
    r3 = 2 * ho3 + 1                      # padded rows per image (dsconv2)

    def wseg(w_ref, key):                 # bf16 matmul weights (static slice)
        off, rows, cols = wsegs[key]
        return w_ref[off:off + rows, 0:cols]

    def cseg(c_ref, key):                 # f32 dw taps / BN shift rows
        off, rows, cols = csegs[key]
        return c_ref[off:off + rows, 0:cols]

    def dsconv(y, c_ref, w_ref, buf, hi, ho, rpad, wic,
               dw_key, col_key, dsh_key, pw_key, psh_key):
        dw = cseg(c_ref, dw_key)                                   # (9, wic)
        t_rows = []
        for b in range(bt):
            base = b * rpad
            yb = y[b * hi:(b + 1) * hi, :]                         # (hi, wic)
            # zero-padded staging buffer: row r = input row (r - 1)
            buf[base:base + 1, :] = jnp.zeros((1, wic), f32)
            buf[base + 1:base + 1 + hi, :] = yb
            if rpad > hi + 1:
                buf[base + 1 + hi:base + rpad, :] = jnp.zeros((rpad - hi - 1, wic), f32)
            # stride-2 row taps via strided sublane loads (no selection matmuls)
            r0 = buf[pl.ds(base + 0, ho, stride=2), :]
            r1 = buf[pl.ds(base + 1, ho, stride=2), :]
            r2_ = buf[pl.ds(base + 2, ho, stride=2), :]
            # depthwise MACs on the VPU; concat the 3 kx taps along K
            t_rows.append(jnp.concatenate(
                [r0 * dw[kx:kx + 1, :]
                 + r1 * dw[3 + kx:4 + kx, :]
                 + r2_ * dw[6 + kx:7 + kx, :] for kx in range(3)], axis=1))
        t_cat = jnp.concatenate(t_rows, axis=0)                    # (bt*ho, 3*wic)
        # W stride/pad + channel select as ONE fused-K MXU dot
        z = jnp.dot(t_cat.astype(bf16), wseg(w_ref, col_key),
                    preferred_element_type=f32)
        z = jnp.maximum(z + cseg(c_ref, dsh_key), 0.0)
        # pointwise 1x1 (block-diagonal) + BN shift + ReLU
        z = jnp.dot(z.astype(bf16), wseg(w_ref, pw_key),
                    preferred_element_type=f32)
        return jnp.maximum(z + cseg(c_ref, psh_key), 0.0)

    def kernel(x_ref, w_ref, c_ref, o_ref, buf2, buf3):
        # ---- stage 1: 3x3 s2 p0 conv + BN + ReLU, fused K = 3*W*Cin --------
        rows_cat = []
        for b in range(bt):
            tap01 = x_ref[b, 0:ho1, :]                 # rows 2oh, 2oh+1 (pair layout)
            tap2 = x_ref[b, 1:ho1 + 1, 0:wcin]         # rows 2oh+2
            rows_cat.append(jnp.concatenate([tap01, tap2], axis=1))
        rows_cat = jnp.concatenate(rows_cat, axis=0)   # (bt*Ho1, 3*W*Cin) bf16
        y = jnp.dot(rows_cat, wseg(w_ref, 'g1'), preferred_element_type=f32)
        y = jnp.maximum(y + cseg(c_ref, 'sh1'), 0.0)   # (bt*Ho1, Wo1*C1)

        # ---- stage 2 / 3: depthwise 3x3 s2 p1 + BN + ReLU, 1x1 + BN + ReLU --
        y = dsconv(y, c_ref, w_ref, buf2, ho1, ho2, r2, w1c,
                   'dw1', 'col2', 'dsh1', 'pw2', 'psh1')
        y = dsconv(y, c_ref, w_ref, buf3, ho2, ho3, r3, w2c2,
                   'dw2', 'col3', 'dsh2', 'pw3', 'psh2')

        for b in range(bt):                            # lane-dense (128) stores
            o_ref[b] = y[b * ho3:(b + 1) * ho3, :].astype(o_ref.dtype)

    return kernel, (bt * r2, w1c), (bt * r3, w2c2)


# ------------------------------- entry point --------------------------------- #

def learning_to_downsample(x_nchw, prep, b_tile=None):
    wslab, cslab, cfg = prep
    n, cin, h, w = x_nchw.shape
    assert (cin, h, w) == (cfg['cin'], cfg['h'], cfg['w'])
    if b_tile is None:
        # keep grid length at 2 (megacore) and fold the rest of the batch into M
        b_tile = max(1, n // 2)
    assert n % b_tile == 0
    grid_n = n // b_tile

    # lane-dense pair-row layout (pure metadata reshape) + bf16 input DMA
    x2 = jnp.transpose(x_nchw, (0, 2, 3, 1)).reshape(n, h // 2, 2 * w * cin)
    x2 = x2.astype(jnp.bfloat16)

    kernel, buf2_shape, buf3_shape = _make_ltd_kernel(cfg, b_tile)
    ho3, wo3, c3 = cfg['ho3'], cfg['wo3'], cfg['c3']

    def resident(a):        # constant block index -> fetched once, stays in VMEM
        return pl.BlockSpec(a.shape, lambda g: (0,) * a.ndim)

    out = pl.pallas_call(
        kernel,
        out_shape=jax.ShapeDtypeStruct((n, ho3, wo3 * c3), jnp.float32),
        grid_spec=pltpu.PrefetchScalarGridSpec(
            num_scalar_prefetch=0,
            grid=(grid_n,),
            in_specs=[pl.BlockSpec((b_tile, h // 2, 2 * w * cin),
                                   lambda g: (g, 0, 0)),
                      resident(wslab),
                      resident(cslab)],
            out_specs=pl.BlockSpec((b_tile, ho3, wo3 * c3), lambda g: (g, 0, 0)),
            scratch_shapes=[pltpu.VMEM(buf2_shape, jnp.float32),
                            pltpu.VMEM(buf3_shape, jnp.float32)]),
        compiler_params=pltpu.CompilerParams(
            dimension_semantics=("parallel",),
            vmem_limit_bytes=32 * 1024 * 1024),
    )(x2, wslab, cslab)

    # NHWC -> NCHW to match the PyTorch module's output layout.
    return jnp.transpose(out.reshape(n, ho3, wo3, c3), (0, 3, 1, 2))


# --------------------------- reference (pure JAX) ---------------------------- #

def _ref_forward(x_nchw, params):
    x = jnp.transpose(x_nchw, (0, 2, 3, 1))

    def conv(x, w, stride, pad, groups=1):
        return jax.lax.conv_general_dilated(
            x, jnp.transpose(w, (2, 3, 1, 0)), (stride, stride),
            [(pad, pad), (pad, pad)],
            dimension_numbers=("NHWC", "HWIO", "NHWC"),
            feature_group_count=groups,
            precision=jax.lax.Precision.HIGHEST)

    def bn_relu(x, bnp):
        g, b, m, v = bnp
        return jnp.maximum(g * (x - m) / jnp.sqrt(v + BN_EPS) + b, 0.0)

    y = bn_relu(conv(x, params['conv_w'], 2, 0), params['bn1'])
    y = bn_relu(conv(y, params['dw1_w'], 2, 1, groups=y.shape[-1]), params['dw1_bn'])
    y = bn_relu(conv(y, params['pw1_w'], 1, 0), params['pw1_bn'])
    y = bn_relu(conv(y, params['dw2_w'], 2, 1, groups=y.shape[-1]), params['dw2_bn'])
    y = bn_relu(conv(y, params['pw2_w'], 1, 0), params['pw2_bn'])
    return jnp.transpose(y, (0, 3, 1, 2))


# ------------------------------ params init ---------------------------------- #

def init_params(key, cin, c1, c2, c3):
    ks = jax.random.split(key, 10)

    def bn(k, c):
        k1, k2, k3, k4 = jax.random.split(k, 4)
        gamma = 1.0 + 0.1 * jax.random.normal(k1, (c,), jnp.float32)
        beta = 0.1 * jax.random.normal(k2, (c,), jnp.float32)
        mean = 0.1 * jax.random.normal(k3, (c,), jnp.float32)
        var = jax.random.uniform(k4, (c,), jnp.float32, minval=0.5, maxval=1.5)
        return (gamma, beta, mean, var)

    return dict(
        conv_w=0.1 * jax.random.normal(ks[0], (c1, cin, 3, 3), jnp.float32),
        bn1=bn(ks[1], c1),
        dw1_w=0.1 * jax.random.normal(ks[2], (c1, 1, 3, 3), jnp.float32),
        dw1_bn=bn(ks[3], c1),
        pw1_w=0.1 * jax.random.normal(ks[4], (c2, c1, 1, 1), jnp.float32),
        pw1_bn=bn(ks[5], c2),
        dw2_w=0.1 * jax.random.normal(ks[6], (c2, 1, 3, 3), jnp.float32),
        dw2_bn=bn(ks[7], c2),
        pw2_w=0.1 * jax.random.normal(ks[8], (c3, c2, 1, 1), jnp.float32),
        pw2_bn=bn(ks[9], c3),
    )


if __name__ == "__main__":
    key = jax.random.PRNGKey(0)
    k_x, k_p = jax.random.split(key)

    N, Cin, H, W = 4, 4, 32, 32
    dw_channels = (8, 16)
    out_channels = 32

    x = jax.random.normal(k_x, (N, Cin, H, W), jnp.float32)
    params = init_params(k_p, Cin, dw_channels[0], dw_channels[1], out_channels)

    prep = prepare_ltd(params, (Cin, H, W))      # one-time constant folding
    fwd = jax.jit(lambda xx: learning_to_downsample(xx, prep))

    out = jax.block_until_ready(fwd(x))
    # spatial: 32 -> 15 (conv s2 p0) -> 8 (dsconv1) -> 4 (dsconv2)
    assert out.shape == (N, out_channels, 4, 4), out.shape

    ref = jax.block_until_ready(_ref_forward(x, params))
    max_err = float(jnp.max(jnp.abs(out - ref)))
    assert jnp.allclose(out, ref, rtol=2e-2, atol=2e-2), max_err

    print("KERNEL_OK")
</pallas_src>

<mosaic_0001>
module attributes {stable_mosaic.version = 11 : i64} {
  func.func @kernel(%arg0: i32, %arg1: memref<2x16x256xbf16, #tpu.memory_space<vmem>>, %arg2: memref<1264x128xbf16, #tpu.memory_space<vmem>>, %arg3: memref<72x128xf32, #tpu.memory_space<vmem>>, %arg4: memref<2x4x128xf32, #tpu.memory_space<vmem>>, %arg5: memref<34x120xf32, #tpu.memory_space<vmem>>, %arg6: memref<18x128xf32, #tpu.memory_space<vmem>>) attributes {dimension_semantics = [#tpu.dimension_semantics<parallel>], iteration_bounds = array<i64: 2>, scalar_prefetch = 0 : i64, scratch_operands = 2 : i64, tpu.core_type = #tpu.core_type<tc>, window_params = [{transform_indices = @transform_0, window_bounds = array<i64: 2, 16, 256>}, {pipeline_mode = #tpu.pipeline_mode<synchronous>, transform_indices = @transform_1, window_bounds = array<i64: 1264, 128>}, {pipeline_mode = #tpu.pipeline_mode<synchronous>, transform_indices = @transform_2, window_bounds = array<i64: 72, 128>}, {transform_indices = @transform_3, window_bounds = array<i64: 2, 4, 128>}]} {
    %c0 = arith.constant 0 : index
    %c0_0 = arith.constant 0 : index
    %c0_1 = arith.constant 0 : index
    %0 = vector.load %arg1[%c0, %c0_0, %c0_1] : memref<2x16x256xbf16, #tpu.memory_space<vmem>>, vector<1x15x256xbf16>
    %1 = vector.shape_cast %0 : vector<1x15x256xbf16> to vector<15x256xbf16>
    %c0_2 = arith.constant 0 : index
    %c1 = arith.constant 1 : index
    %c0_3 = arith.constant 0 : index
    %2 = vector.load %arg1[%c0_2, %c1, %c0_3] : memref<2x16x256xbf16, #tpu.memory_space<vmem>>, vector<1x15x128xbf16>
    %3 = vector.shape_cast %2 : vector<1x15x128xbf16> to vector<15x128xbf16>
    %4 = tpu.concatenate %1, %3 in 1 : vector<15x256xbf16>, vector<15x128xbf16> -> vector<15x384xbf16>
    %c1_4 = arith.constant 1 : index
    %c0_5 = arith.constant 0 : index
    %c0_6 = arith.constant 0 : index
    %5 = vector.load %arg1[%c1_4, %c0_5, %c0_6] : memref<2x16x256xbf16, #tpu.memory_space<vmem>>, vector<1x15x256xbf16>
    %6 = vector.shape_cast %5 : vector<1x15x256xbf16> to vector<15x256xbf16>
    %c1_7 = arith.constant 1 : index
    %c1_8 = arith.constant 1 : index
    %c0_9 = arith.constant 0 : index
    %7 = vector.load %arg1[%c1_7, %c1_8, %c0_9] : memref<2x16x256xbf16, #tpu.memory_space<vmem>>, vector<1x15x128xbf16>
    %8 = vector.shape_cast %7 : vector<1x15x128xbf16> to vector<15x128xbf16>
    %9 = tpu.concatenate %6, %8 in 1 : vector<15x256xbf16>, vector<15x128xbf16> -> vector<15x384xbf16>
    %10 = tpu.concatenate %4, %9 in 0 : vector<15x384xbf16>, vector<15x384xbf16> -> vector<30x384xbf16>
    %c0_10 = arith.constant 0 : index
    %c0_11 = arith.constant 0 : index
    %11 = vector.load %arg2[%c0_10, %c0_11] : memref<1264x128xbf16, #tpu.memory_space<vmem>>, vector<384x120xbf16>
    %cst = arith.constant dense<0.000000e+00> : vector<30x120xf32>
    %12 = tpu.matmul %10, %11, %cst {dimension_numbers = #tpu.dot_dimension_numbers<[1], [0], [0], [1], [0, 0, 1, 1], [], []>} : vector<30x384xbf16>, vector<384x120xbf16>, vector<30x120xf32> -> vector<30x120xf32>
    %c32 = arith.constant 32 : index
    %c0_12 = arith.constant 0 : index
    %13 = vector.load %arg3[%c32, %c0_12] : memref<72x128xf32, #tpu.memory_space<vmem>>, vector<1x120xf32>
    %14 = vector.broadcast %13 : vector<1x120xf32> to vector<30x120xf32>
    %15 = arith.addf %12, %14 : vector<30x120xf32>
    %cst_13 = arith.constant 0.000000e+00 : f32
    %16 = vector.broadcast %cst_13 : f32 to vector<30x120xf32>
    %17 = arith.maximumf %15, %16 : vector<30x120xf32>
    %c0_14 = arith.constant 0 : index
    %c0_15 = arith.constant 0 : index
    %18 = vector.load %arg3[%c0_14, %c0_15] : memref<72x128xf32, #tpu.memory_space<vmem>>, vector<9x120xf32>
    %19 = vector.extract_strided_slice %17 {offsets = [0, 0], sizes = [15, 120], strides = [1, 1]} : vector<30x120xf32> to vector<15x120xf32>
    %cst_16 = arith.constant 0.000000e+00 : f32
    %20 = vector.broadcast %cst_16 : f32 to vector<1x120xf32>
    %c0_17 = arith.constant 0 : index
    %c0_18 = arith.constant 0 : index
    %21 = vector.load %arg5[%c0_17, %c0_18] : memref<34x120xf32, #tpu.memory_space<vmem>>, vector<1x120xf32>
    tpu.vector_store %arg5[%c0_17, %c0_18], %20 {strides = array<i32>} : memref<34x120xf32, #tpu.memory_space<vmem>>, vector<1x120xf32>,
    %c1_19 = arith.constant 1 : index
    %c0_20 = arith.constant 0 : index
    %22 = vector.load %arg5[%c1_19, %c0_20] : memref<34x120xf32, #tpu.memory_space<vmem>>, vector<15x120xf32>
    tpu.vector_store %arg5[%c1_19, %c0_20], %19 {strides = array<i32>} : memref<34x120xf32, #tpu.memory_space<vmem>>, vector<15x120xf32>,
    %cst_21 = arith.constant 0.000000e+00 : f32
    %23 = vector.broadcast %cst_21 : f32 to vector<1x120xf32>
    %c16 = arith.constant 16 : index
    %c0_22 = arith.constant 0 : index
    %24 = vector.load %arg5[%c16, %c0_22] : memref<34x120xf32, #tpu.memory_space<vmem>>, vector<1x120xf32>
    tpu.vector_store %arg5[%c16, %c0_22], %23 {strides = array<i32>} : memref<34x120xf32, #tpu.memory_space<vmem>>, vector<1x120xf32>,
    %c0_23 = arith.constant 0 : index
    %c0_24 = arith.constant 0 : index
    %25 = tpu.strided_load %arg5[%c0_23, %c0_24] {strides = array<i32: 2, 1>} : memref<34x120xf32, #tpu.memory_space<vmem>>, vector<8x120xf32>
    %c1_25 = arith.constant 1 : index
    %c0_26 = arith.constant 0 : index
    %26 = tpu.strided_load %arg5[%c1_25, %c0_26] {strides = array<i32: 2, 1>} : memref<34x120xf32, #tpu.memory_space<vmem>>, vector<8x120xf32>
    %c2 = arith.constant 2 : index
    %c0_27 = arith.constant 0 : index
    %27 = tpu.strided_load %arg5[%c2, %c0_27] {strides = array<i32: 2, 1>} : memref<34x120xf32, #tpu.memory_space<vmem>>, vector<8x120xf32>
    %28 = vector.extract_strided_slice %18 {offsets = [0, 0], sizes = [1, 120], strides = [1, 1]} : vector<9x120xf32> to vector<1x120xf32>
    %29 = vector.broadcast %28 : vector<1x120xf32> to vector<8x120xf32>
    %30 = arith.mulf %25, %29 : vector<8x120xf32>
    %31 = vector.extract_strided_slice %18 {offsets = [3, 0], sizes = [1, 120], strides = [1, 1]} : vector<9x120xf32> to vector<1x120xf32>
    %32 = vector.broadcast %31 : vector<1x120xf32> to vector<8x120xf32>
    %33 = arith.mulf %26, %32 : vector<8x120xf32>
    %34 = arith.addf %30, %33 : vector<8x120xf32>
    %35 = vector.extract_strided_slice %18 {offsets = [6, 0], sizes = [1, 120], strides = [1, 1]} : vector<9x120xf32> to vector<1x120xf32>
    %36 = vector.broadcast %35 : vector<1x120xf32> to vector<8x120xf32>
    %37 = arith.mulf %27, %36 : vector<8x120xf32>
    %38 = arith.addf %34, %37 : vector<8x120xf32>
    %39 = vector.extract_strided_slice %18 {offsets = [1, 0], sizes = [1, 120], strides = [1, 1]} : vector<9x120xf32> to vector<1x120xf32>
    %40 = vector.broadcast %39 : vector<1x120xf32> to vector<8x120xf32>
    %41 = arith.mulf %25, %40 : vector<8x120xf32>
    %42 = vector.extract_strided_slice %18 {offsets = [4, 0], sizes = [1, 120], strides = [1, 1]} : vector<9x120xf32> to vector<1x120xf32>
    %43 = vector.broadcast %42 : vector<1x120xf32> to vector<8x120xf32>
    %44 = arith.mulf %26, %43 : vector<8x120xf32>
    %45 = arith.addf %41, %44 : vector<8x120xf32>
    %46 = vector.extract_strided_slice %18 {offsets = [7, 0], sizes = [1, 120], strides = [1, 1]} : vector<9x120xf32> to vector<1x120xf32>
    %47 = vector.broadcast %46 : vector<1x120xf32> to vector<8x120xf32>
    %48 = arith.mulf %27, %47 : vector<8x120xf32>
    %49 = arith.addf %45, %48 : vector<8x120xf32>
    %50 = vector.extract_strided_slice %18 {offsets = [2, 0], sizes = [1, 120], strides = [1, 1]} : vector<9x120xf32> to vector<1x120xf32>
    %51 = vector.broadcast %50 : vector<1x120xf32> to vector<8x120xf32>
    %52 = arith.mulf %25, %51 : vector<8x120xf32>
    %53 = vector.extract_strided_slice %18 {offsets = [5, 0], sizes = [1, 120], strides = [1, 1]} : vector<9x120xf32> to vector<1x120xf32>
    %54 = vector.broadcast %53 : vector<1x120xf32> to vector<8x120xf32>
    %55 = arith.mulf %26, %54 : vector<8x120xf32>
    %56 = arith.addf %52, %55 : vector<8x120xf32>
    %57 = vector.extract_strided_slice %18 {offsets = [8, 0], sizes = [1, 120], strides = [1, 1]} : vector<9x120xf32> to vector<1x120xf32>
    %58 = vector.broadcast %57 : vector<1x120xf32> to vector<8x120xf32>
    %59 = arith.mulf %27, %58 : vector<8x120xf32>
    %60 = arith.addf %56, %59 : vector<8x120xf32>
    %61 = tpu.concatenate %38, %49, %60 in 1 : vector<8x120xf32>, vector<8x120xf32>, vector<8x120xf32> -> vector<8x360xf32>
    %62 = vector.extract_strided_slice %17 {offsets = [15, 0], sizes = [15, 120], strides = [1, 1]} : vector<30x120xf32> to vector<15x120xf32>
    %cst_28 = arith.constant 0.000000e+00 : f32
    %63 = vector.broadcast %cst_28 : f32 to vector<1x120xf32>
    %c17 = arith.constant 17 : index
    %c0_29 = arith.constant 0 : index
    %64 = vector.load %arg5[%c17, %c0_29] : memref<34x120xf32, #tpu.memory_space<vmem>>, vector<1x120xf32>
    tpu.vector_store %arg5[%c17, %c0_29], %63 {strides = array<i32>} : memref<34x120xf32, #tpu.memory_space<vmem>>, vector<1x120xf32>,
    %c18 = arith.constant 18 : index
    %c0_30 = arith.constant 0 : index
    %65 = vector.load %arg5[%c18, %c0_30] : memref<34x120xf32, #tpu.memory_space<vmem>>, vector<15x120xf32>
    tpu.vector_store %arg5[%c18, %c0_30], %62 {strides = array<i32>} : memref<34x120xf32, #tpu.memory_space<vmem>>, vector<15x120xf32>,
    %cst_31 = arith.constant 0.000000e+00 : f32
    %66 = vector.broadcast %cst_31 : f32 to vector<1x120xf32>
    %c33 = arith.constant 33 : index
    %c0_32 = arith.constant 0 : index
    %67 = vector.load %arg5[%c33, %c0_32] : memref<34x120xf32, #tpu.memory_space<vmem>>, vector<1x120xf32>
    tpu.vector_store %arg5[%c33, %c0_32], %66 {strides = array<i32>} : memref<34x120xf32, #tpu.memory_space<vmem>>, vector<1x120xf32>,
    %c17_33 = arith.constant 17 : index
    %c0_34 = arith.constant 0 : index
    %68 = tpu.strided_load %arg5[%c17_33, %c0_34] {strides = array<i32: 2, 1>} : memref<34x120xf32, #tpu.memory_space<vmem>>, vector<8x120xf32>
    %c18_35 = arith.constant 18 : index
    %c0_36 = arith.constant 0 : index
    %69 = tpu.strided_load %arg5[%c18_35, %c0_36] {strides = array<i32: 2, 1>} : memref<34x120xf32, #tpu.memory_space<vmem>>, vector<8x120xf32>
    %c19 = arith.constant 19 : index
    %c0_37 = arith.constant 0 : index
    %70 = tpu.strided_load %arg5[%c19, %c0_37] {strides = array<i32: 2, 1>} : memref<34x120xf32, #tpu.memory_space<vmem>>, vector<8x120xf32>
    %71 = vector.extract_strided_slice %18 {offsets = [0, 0], sizes = [1, 120], strides = [1, 1]} : vector<9x120xf32> to vector<1x120xf32>
    %72 = vector.broadcast %71 : vector<1x120xf32> to vector<8x120xf32>
    %73 = arith.mulf %68, %72 : vector<8x120xf32>
    %74 = vector.extract_strided_slice %18 {offsets = [3, 0], sizes = [1, 120], strides = [1, 1]} : vector<9x120xf32> to vector<1x120xf32>
    %75 = vector.broadcast %74 : vector<1x120xf32> to vector<8x120xf32>
    %76 = arith.mulf %69, %75 : vector<8x120xf32>
    %77 = arith.addf %73, %76 : vector<8x120xf32>
    %78 = vector.extract_strided_slice %18 {offsets = [6, 0], sizes = [1, 120], strides = [1, 1]} : vector<9x120xf32> to vector<1x120xf32>
    %79 = vector.broadcast %78 : vector<1x120xf32> to vector<8x120xf32>
    %80 = arith.mulf %70, %79 : vector<8x120xf32>
    %81 = arith.addf %77, %80 : vector<8x120xf32>
    %82 = vector.extract_strided_slice %18 {offsets = [1, 0], sizes = [1, 120], strides = [1, 1]} : vector<9x120xf32> to vector<1x120xf32>
    %83 = vector.broadcast %82 : vector<1x120xf32> to vector<8x120xf32>
    %84 = arith.mulf %68, %83 : vector<8x120xf32>
    %85 = vector.extract_strided_slice %18 {offsets = [4, 0], sizes = [1, 120], strides = [1, 1]} : vector<9x120xf32> to vector<1x120xf32>
    %86 = vector.broadcast %85 : vector<1x120xf32> to vector<8x120xf32>
    %87 = arith.mulf %69, %86 : vector<8x120xf32>
    %88 = arith.addf %84, %87 : vector<8x120xf32>
    %89 = vector.extract_strided_slice %18 {offsets = [7, 0], sizes = [1, 120], strides = [1, 1]} : vector<9x120xf32> to vector<1x120xf32>
    %90 = vector.broadcast %89 : vector<1x120xf32> to vector<8x120xf32>
    %91 = arith.mulf %70, %90 : vector<8x120xf32>
    %92 = arith.addf %88, %91 : vector<8x120xf32>
    %93 = vector.extract_strided_slice %18 {offsets = [2, 0], sizes = [1, 120], strides = [1, 1]} : vector<9x120xf32> to vector<1x120xf32>
    %94 = vector.broadcast %93 : vector<1x120xf32> to vector<8x120xf32>
    %95 = arith.mulf %68, %94 : vector<8x120xf32>
    %96 = vector.extract_strided_slice %18 {offsets = [5, 0], sizes = [1, 120], strides = [1, 1]} : vector<9x120xf32> to vector<1x120xf32>
    %97 = vector.broadcast %96 : vector<1x120xf32> to vector<8x120xf32>
    %98 = arith.mulf %69, %97 : vector<8x120xf32>
    %99 = arith.addf %95, %98 : vector<8x120xf32>
    %100 = vector.extract_strided_slice %18 {offsets = [8, 0], sizes = [1, 120], strides = [1, 1]} : vector<9x120xf32> to vector<1x120xf32>
    %101 = vector.broadcast %100 : vector<1x120xf32> to vector<8x120xf32>
    %102 = arith.mulf %70, %101 : vector<8x120xf32>
    %103 = arith.addf %99, %102 : vector<8x120xf32>
    %104 = tpu.concatenate %81, %92, %103 in 1 : vector<8x120xf32>, vector<8x120xf32>, vector<8x120xf32> -> vector<8x360xf32>
    %105 = tpu.concatenate %61, %104 in 0 : vector<8x360xf32>, vector<8x360xf32> -> vector<16x360xf32>
    %106 = arith.truncf %105 : vector<16x360xf32> to vector<16x360xbf16>
    %c384 = arith.constant 384 : index
    %c0_38 = arith.constant 0 : index
    %107 = vector.load %arg2[%c384, %c0_38] : memref<1264x128xbf16, #tpu.memory_space<vmem>>, vector<360x64xbf16>
    %cst_39 = arith.constant dense<0.000000e+00> : vector<16x64xf32>
    %108 = tpu.matmul %106, %107, %cst_39 {dimension_numbers = #tpu.dot_dimension_numbers<[1], [0], [0], [1], [0, 0, 1, 1], [], []>} : vector<16x360xbf16>, vector<360x64xbf16>, vector<16x64xf32> -> vector<16x64xf32>
    %c40 = arith.constant 40 : index
    %c0_40 = arith.constant 0 : index
    %109 = vector.load %arg3[%c40, %c0_40] : memref<72x128xf32, #tpu.memory_space<vmem>>, vector<1x64xf32>
    %110 = vector.broadcast %109 : vector<1x64xf32> to vector<16x64xf32>
    %111 = arith.addf %108, %110 : vector<16x64xf32>
    %cst_41 = arith.constant 0.000000e+00 : f32
    %112 = vector.broadcast %cst_41 : f32 to vector<16x64xf32>
    %113 = arith.maximumf %111, %112 : vector<16x64xf32>
    %114 = arith.truncf %113 : vector<16x64xf32> to vector<16x64xbf16>
    %c752 = arith.constant 752 : index
    %c0_42 = arith.constant 0 : index
    %115 = vector.load %arg2[%c752, %c0_42] : memref<1264x128xbf16, #tpu.memory_space<vmem>>, vector<64x128xbf16>
    %cst_43 = arith.constant dense<0.000000e+00> : vector<16x128xf32>
    %116 = tpu.matmul %114, %115, %cst_43 {dimension_numbers = #tpu.dot_dimension_numbers<[1], [0], [0], [1], [0, 0, 1, 1], [], []>} : vector<16x64xbf16>, vector<64x128xbf16>, vector<16x128xf32> -> vector<16x128xf32>
    %c48 = arith.constant 48 : index
    %c0_44 = arith.constant 0 : index
    %117 = vector.load %arg3[%c48, %c0_44] : memref<72x128xf32, #tpu.memory_space<vmem>>, vector<1x128xf32>
    %118 = vector.broadcast %117 : vector<1x128xf32> to vector<16x128xf32>
    %119 = arith.addf %116, %118 : vector<16x128xf32>
    %cst_45 = arith.constant 0.000000e+00 : f32
    %120 = vector.broadcast %cst_45 : f32 to vector<16x128xf32>
    %121 = arith.maximumf %119, %120 : vector<16x128xf32>
    %c16_46 = arith.constant 16 : index
    %c0_47 = arith.constant 0 : index
    %122 = vector.load %arg3[%c16_46, %c0_47] : memref<72x128xf32, #tpu.memory_space<vmem>>, vector<9x128xf32>
    %123 = vector.extract_strided_slice %121 {offsets = [0, 0], sizes = [8, 128], strides = [1, 1]} : vector<16x128xf32> to vector<8x128xf32>
    %cst_48 = arith.constant 0.000000e+00 : f32
    %124 = vector.broadcast %cst_48 : f32 to vector<1x128xf32>
    %c0_49 = arith.constant 0 : index
    %c0_50 = arith.constant 0 : index
    %125 = vector.load %arg6[%c0_49, %c0_50] : memref<18x128xf32, #tpu.memory_space<vmem>>, vector<1x128xf32>
    tpu.vector_store %arg6[%c0_49, %c0_50], %124 {strides = array<i32>} : memref<18x128xf32, #tpu.memory_space<vmem>>, vector<1x128xf32>,
    %c1_51 = arith.constant 1 : index
    %c0_52 = arith.constant 0 : index
    %126 = vector.load %arg6[%c1_51, %c0_52] : memref<18x128xf32, #tpu.memory_space<vmem>>, vector<8x128xf32>
    tpu.vector_store %arg6[%c1_51, %c0_52], %123 {strides = array<i32>} : memref<18x128xf32, #tpu.memory_space<vmem>>, vector<8x128xf32>,
    %c0_53 = arith.constant 0 : index
    %c0_54 = arith.constant 0 : index
    %127 = tpu.strided_load %arg6[%c0_53, %c0_54] {strides = array<i32: 2, 1>} : memref<18x128xf32, #tpu.memory_space<vmem>>, vector<4x128xf32>
    %c1_55 = arith.constant 1 : index
    %c0_56 = arith.constant 0 : index
    %128 = tpu.strided_load %arg6[%c1_55, %c0_56] {strides = array<i32: 2, 1>} : memref<18x128xf32, #tpu.memory_space<vmem>>, vector<4x128xf32>
    %c2_57 = arith.constant 2 : index
    %c0_58 = arith.constant 0 : index
    %129 = tpu.strided_load %arg6[%c2_57, %c0_58] {strides = array<i32: 2, 1>} : memref<18x128xf32, #tpu.memory_space<vmem>>, vector<4x128xf32>
    %130 = vector.extract_strided_slice %122 {offsets = [0, 0], sizes = [1, 128], strides = [1, 1]} : vector<9x128xf32> to vector<1x128xf32>
    %131 = vector.broadcast %130 : vector<1x128xf32> to vector<4x128xf32>
    %132 = arith.mulf %127, %131 : vector<4x128xf32>
    %133 = vector.extract_strided_slice %122 {offsets = [3, 0], sizes = [1, 128], strides = [1, 1]} : vector<9x128xf32> to vector<1x128xf32>
    %134 = vector.broadcast %133 : vector<1x128xf32> to vector<4x128xf32>
    %135 = arith.mulf %128, %134 : vector<4x128xf32>
    %136 = arith.addf %132, %135 : vector<4x128xf32>
    %137 = vector.extract_strided_slice %122 {offsets = [6, 0], sizes = [1, 128], strides = [1, 1]} : vector<9x128xf32> to vector<1x128xf32>
    %138 = vector.broadcast %137 : vector<1x128xf32> to vector<4x128xf32>
    %139 = arith.mulf %129, %138 : vector<4x128xf32>
    %140 = arith.addf %136, %139 : vector<4x128xf32>
    %141 = vector.extract_strided_slice %122 {offsets = [1, 0], sizes = [1, 128], strides = [1, 1]} : vector<9x128xf32> to vector<1x128xf32>
    %142 = vector.broadcast %141 : vector<1x128xf32> to vector<4x128xf32>
    %143 = arith.mulf %127, %142 : vector<4x128xf32>
    %144 = vector.extract_strided_slice %122 {offsets = [4, 0], sizes = [1, 128], strides = [1, 1]} : vector<9x128xf32> to vector<1x128xf32>
    %145 = vector.broadcast %144 : vector<1x128xf32> to vector<4x128xf32>
    %146 = arith.mulf %128, %145 : vector<4x128xf32>
    %147 = arith.addf %143, %146 : vector<4x128xf32>
    %148 = vector.extract_strided_slice %122 {offsets = [7, 0], sizes = [1, 128], strides = [1, 1]} : vector<9x128xf32> to vector<1x128xf32>
    %149 = vector.broadcast %148 : vector<1x128xf32> to vector<4x128xf32>
    %150 = arith.mulf %129, %149 : vector<4x128xf32>
    %151 = arith.addf %147, %150 : vector<4x128xf32>
    %152 = vector.extract_strided_slice %122 {offsets = [2, 0], sizes = [1, 128], strides = [1, 1]} : vector<9x128xf32> to vector<1x128xf32>
    %153 = vector.broadcast %152 : vector<1x128xf32> to vector<4x128xf32>
    %154 = arith.mulf %127, %153 : vector<4x128xf32>
    %155 = vector.extract_strided_slice %122 {offsets = [5, 0], sizes = [1, 128], strides = [1, 1]} : vector<9x128xf32> to vector<1x128xf32>
    %156 = vector.broadcast %155 : vector<1x128xf32> to vector<4x128xf32>
    %157 = arith.mulf %128, %156 : vector<4x128xf32>
    %158 = arith.addf %154, %157 : vector<4x128xf32>
    %159 = vector.extract_strided_slice %122 {offsets = [8, 0], sizes = [1, 128], strides = [1, 1]} : vector<9x128xf32> to vector<1x128xf32>
    %160 = vector.broadcast %159 : vector<1x128xf32> to vector<4x128xf32>
    %161 = arith.mulf %129, %160 : vector<4x128xf32>
    %162 = arith.addf %158, %161 : vector<4x128xf32>
    %163 = tpu.concatenate %140, %151, %162 in 1 : vector<4x128xf32>, vector<4x128xf32>, vector<4x128xf32> -> vector<4x384xf32>
    %164 = vector.extract_strided_slice %121 {offsets = [8, 0], sizes = [8, 128], strides = [1, 1]} : vector<16x128xf32> to vector<8x128xf32>
    %cst_59 = arith.constant 0.000000e+00 : f32
    %165 = vector.broadcast %cst_59 : f32 to vector<1x128xf32>
    %c9 = arith.constant 9 : index
    %c0_60 = arith.constant 0 : index
    %166 = vector.load %arg6[%c9, %c0_60] : memref<18x128xf32, #tpu.memory_space<vmem>>, vector<1x128xf32>
    tpu.vector_store %arg6[%c9, %c0_60], %165 {strides = array<i32>} : memref<18x128xf32, #tpu.memory_space<vmem>>, vector<1x128xf32>,
    %c10 = arith.constant 10 : index
    %c0_61 = arith.constant 0 : index
    %167 = vector.load %arg6[%c10, %c0_61] : memref<18x128xf32, #tpu.memory_space<vmem>>, vector<8x128xf32>
    tpu.vector_store %arg6[%c10, %c0_61], %164 {strides = array<i32>} : memref<18x128xf32, #tpu.memory_space<vmem>>, vector<8x128xf32>,
    %c9_62 = arith.constant 9 : index
    %c0_63 = arith.constant 0 : index
    %168 = tpu.strided_load %arg6[%c9_62, %c0_63] {strides = array<i32: 2, 1>} : memref<18x128xf32, #tpu.memory_space<vmem>>, vector<4x128xf32>
    %c10_64 = arith.constant 10 : index
    %c0_65 = arith.constant 0 : index
    %169 = tpu.strided_load %arg6[%c10_64, %c0_65] {strides = array<i32: 2, 1>} : memref<18x128xf32, #tpu.memory_space<vmem>>, vector<4x128xf32>
    %c11 = arith.constant 11 : index
    %c0_66 = arith.constant 0 : index
    %170 = tpu.strided_load %arg6[%c11, %c0_66] {strides = array<i32: 2, 1>} : memref<18x128xf32, #tpu.memory_space<vmem>>, vector<4x128xf32>
    %171 = vector.extract_strided_slice %122 {offsets = [0, 0], sizes = [1, 128], strides = [1, 1]} : vector<9x128xf32> to vector<1x128xf32>
    %172 = vector.broadcast %171 : vector<1x128xf32> to vector<4x128xf32>
    %173 = arith.mulf %168, %172 : vector<4x128xf32>
    %174 = vector.extract_strided_slice %122 {offsets = [3, 0], sizes = [1, 128], strides = [1, 1]} : vector<9x128xf32> to vector<1x128xf32>
    %175 = vector.broadcast %174 : vector<1x128xf32> to vector<4x128xf32>
    %176 = arith.mulf %169, %175 : vector<4x128xf32>
    %177 = arith.addf %173, %176 : vector<4x128xf32>
    %178 = vector.extract_strided_slice %122 {offsets = [6, 0], sizes = [1, 128], strides = [1, 1]} : vector<9x128xf32> to vector<1x128xf32>
    %179 = vector.broadcast %178 : vector<1x128xf32> to vector<4x128xf32>
    %180 = arith.mulf %170, %179 : vector<4x128xf32>
    %181 = arith.addf %177, %180 : vector<4x128xf32>
    %182 = vector.extract_strided_slice %122 {offsets = [1, 0], sizes = [1, 128], strides = [1, 1]} : vector<9x128xf32> to vector<1x128xf32>
    %183 = vector.broadcast %182 : vector<1x128xf32> to vector<4x128xf32>
    %184 = arith.mulf %168, %183 : vector<4x128xf32>
    %185 = vector.extract_strided_slice %122 {offsets = [4, 0], sizes = [1, 128], strides = [1, 1]} : vector<9x128xf32> to vector<1x128xf32>
    %186 = vector.broadcast %185 : vector<1x128xf32> to vector<4x128xf32>
    %187 = arith.mulf %169, %186 : vector<4x128xf32>
    %188 = arith.addf %184, %187 : vector<4x128xf32>
    %189 = vector.extract_strided_slice %122 {offsets = [7, 0], sizes = [1, 128], strides = [1, 1]} : vector<9x128xf32> to vector<1x128xf32>
    %190 = vector.broadcast %189 : vector<1x128xf32> to vector<4x128xf32>
    %191 = arith.mulf %170, %190 : vector<4x128xf32>
    %192 = arith.addf %188, %191 : vector<4x128xf32>
    %193 = vector.extract_strided_slice %122 {offsets = [2, 0], sizes = [1, 128], strides = [1, 1]} : vector<9x128xf32> to vector<1x128xf32>
    %194 = vector.broadcast %193 : vector<1x128xf32> to vector<4x128xf32>
    %195 = arith.mulf %168, %194 : vector<4x128xf32>
    %196 = vector.extract_strided_slice %122 {offsets = [5, 0], sizes = [1, 128], strides = [1, 1]} : vector<9x128xf32> to vector<1x128xf32>
    %197 = vector.broadcast %196 : vector<1x128xf32> to vector<4x128xf32>
    %198 = arith.mulf %169, %197 : vector<4x128xf32>
    %199 = arith.addf %195, %198 : vector<4x128xf32>
    %200 = vector.extract_strided_slice %122 {offsets = [8, 0], sizes = [1, 128], strides = [1, 1]} : vector<9x128xf32> to vector<1x128xf32>
    %201 = vector.broadcast %200 : vector<1x128xf32> to vector<4x128xf32>
    %202 = arith.mulf %170, %201 : vector<4x128xf32>
    %203 = arith.addf %199, %202 : vector<4x128xf32>
    %204 = tpu.concatenate %181, %192, %203 in 1 : vector<4x128xf32>, vector<4x128xf32>, vector<4x128xf32> -> vector<4x384xf32>
    %205 = tpu.concatenate %163, %204 in 0 : vector<4x384xf32>, vector<4x384xf32> -> vector<8x384xf32>
    %206 = arith.truncf %205 : vector<8x384xf32> to vector<8x384xbf16>
    %c816 = arith.constant 816 : index
    %c0_67 = arith.constant 0 : index
    %207 = vector.load %arg2[%c816, %c0_67] : memref<1264x128xbf16, #tpu.memory_space<vmem>>, vector<384x64xbf16>
    %cst_68 = arith.constant dense<0.000000e+00> : vector<8x64xf32>
    %208 = tpu.matmul %206, %207, %cst_68 {dimension_numbers = #tpu.dot_dimension_numbers<[1], [0], [0], [1], [0, 0, 1, 1], [], []>} : vector<8x384xbf16>, vector<384x64xbf16>, vector<8x64xf32> -> vector<8x64xf32>
    %c56 = arith.constant 56 : index
    %c0_69 = arith.constant 0 : index
    %209 = vector.load %arg3[%c56, %c0_69] : memref<72x128xf32, #tpu.memory_space<vmem>>, vector<1x64xf32>
    %210 = vector.broadcast %209 : vector<1x64xf32> to vector<8x64xf32>
    %211 = arith.addf %208, %210 : vector<8x64xf32>
    %cst_70 = arith.constant 0.000000e+00 : f32
    %212 = vector.broadcast %cst_70 : f32 to vector<8x64xf32>
    %213 = arith.maximumf %211, %212 : vector<8x64xf32>
    %214 = arith.truncf %213 : vector<8x64xf32> to vector<8x64xbf16>
    %c1200 = arith.constant 1200 : index
    %c0_71 = arith.constant 0 : index
    %215 = vector.load %arg2[%c1200, %c0_71] : memref<1264x128xbf16, #tpu.memory_space<vmem>>, vector<64x128xbf16>
    %cst_72 = arith.constant dense<0.000000e+00> : vector<8x128xf32>
    %216 = tpu.matmul %214, %215, %cst_72 {dimension_numbers = #tpu.dot_dimension_numbers<[1], [0], [0], [1], [0, 0, 1, 1], [], []>} : vector<8x64xbf16>, vector<64x128xbf16>, vector<8x128xf32> -> vector<8x128xf32>
    %c64 = arith.constant 64 : index
    %c0_73 = arith.constant 0 : index
    %217 = vector.load %arg3[%c64, %c0_73] : memref<72x128xf32, #tpu.memory_space<vmem>>, vector<1x128xf32>
    %218 = vector.broadcast %217 : vector<1x128xf32> to vector<8x128xf32>
    %219 = arith.addf %216, %218 : vector<8x128xf32>
    %cst_74 = arith.constant 0.000000e+00 : f32
    %220 = vector.broadcast %cst_74 : f32 to vector<8x128xf32>
    %221 = arith.maximumf %219, %220 : vector<8x128xf32>
    %222 = vector.extract_strided_slice %221 {offsets = [0, 0], sizes = [4, 128], strides = [1, 1]} : vector<8x128xf32> to vector<4x128xf32>
    %c0_75 = arith.constant 0 : index
    %c0_76 = arith.constant 0 : index
    %c0_77 = arith.constant 0 : index
    %223 = vector.load %arg4[%c0_75, %c0_76, %c0_77] : memref<2x4x128xf32, #tpu.memory_space<vmem>>, vector<1x4x128xf32>
    %224 = vector.shape_cast %223 : vector<1x4x128xf32> to vector<4x128xf32>
    %225 = vector.shape_cast %222 : vector<4x128xf32> to vector<1x4x128xf32>
    tpu.vector_store %arg4[%c0_75, %c0_76, %c0_77], %225 {strides = array<i32>} : memref<2x4x128xf32, #tpu.memory_space<vmem>>, vector<1x4x128xf32>,
    %226 = vector.extract_strided_slice %221 {offsets = [4, 0], sizes = [4, 128], strides = [1, 1]} : vector<8x128xf32> to vector<4x128xf32>
    %c1_78 = arith.constant 1 : index
    %c0_79 = arith.constant 0 : index
    %c0_80 = arith.constant 0 : index
    %227 = vector.load %arg4[%c1_78, %c0_79, %c0_80] : memref<2x4x128xf32, #tpu.memory_space<vmem>>, vector<1x4x128xf32>
    %228 = vector.shape_cast %227 : vector<1x4x128xf32> to vector<4x128xf32>
    %229 = vector.shape_cast %226 : vector<4x128xf32> to vector<1x4x128xf32>
    tpu.vector_store %arg4[%c1_78, %c0_79, %c0_80], %229 {strides = array<i32>} : memref<2x4x128xf32, #tpu.memory_space<vmem>>, vector<1x4x128xf32>,
    return
  }
  func.func @transform_0(%arg0: i32) -> (i32, i32, i32) {
    %c0_i32 = arith.constant 0 : i32
    %c0_i32_0 = arith.constant 0 : i32
    %c0_i32_1 = arith.constant 0 : i32
    return %arg0, %c0_i32, %c0_i32_0 : i32, i32, i32
  }
  func.func @transform_1(%arg0: i32) -> (i32, i32) {
    %c0_i32 = arith.constant 0 : i32
    %c0_i32_0 = arith.constant 0 : i32
    %c0_i32_1 = arith.constant 0 : i32
    return %c0_i32, %c0_i32_0 : i32, i32
  }
  func.func @transform_2(%arg0: i32) -> (i32, i32) {
    %c0_i32 = arith.constant 0 : i32
    %c0_i32_0 = arith.constant 0 : i32
    %c0_i32_1 = arith.constant 0 : i32
    return %c0_i32, %c0_i32_0 : i32, i32
  }
  func.func @transform_3(%arg0: i32) -> (i32, i32, i32) {
    %c0_i32 = arith.constant 0 : i32
    %c0_i32_0 = arith.constant 0 : i32
    %c0_i32_1 = arith.constant 0 : i32
    return %arg0, %c0_i32, %c0_i32_0 : i32, i32, i32
  }
}

</mosaic_0001>

<bundles_post_ra>
// kernel: _lambda_.1
= control target key start
LH: loop header
LB: loop body
LE: loop exit
PB: predicated region body
PF: predicated region fallthrough
CT: control target
= control target key end

     0   :  { %s2003_s12 = smov 0   ;;  %s2409_s0 = inlined_call_operand.vmem [shape: bf16[4,16,256], index: 0, kind: input, shape index: {}]   ;;  %s2410_s1 = inlined_call_operand.vmem [shape: bf16[1264,128], index: 1, kind: input, shape index: {}]   ;;  %s2411_s2 = inlined_call_operand.vmem [shape: f32[72,128], index: 2, kind: input, shape index: {}]   ;;  %s2412_s3 = inlined_call_operand.vmem [shape: f32[4,4,128], index: 3, kind: output, shape index: {}]  }
   0x1 LB: > { %s1558_s13 = sadd.s32 4294967295, %s1977_s12   ;;  %p1562_p0 = scmp.ge.s32.totalorder %s1977_s12, 1  ;;  %s1977_s12 = sphi %s2003_s12, %s13_s12  }
   0x2   : > { %p139_p1 = scmp.lt.s32.totalorder %s1977_s12, 3 }
   0x4   : > { %p140_p2 = pnand %p1562_p0, %p139_p1 }
   0x5   : > { %v1884_v0 = vld [vmem:[%s2410_s1 + $0x40] sm:$0xff] (!%p140_p2)   ;;  %v1886_v2 = vld [vmem:[%s2410_s1 + $0x48] sm:$0xff] (!%p140_p2)   ;;  %v1889_v5 = vld [vmem:[%s2410_s1 + $0x50] sm:$0xff] (!%p140_p2)   ;;  %s1563_s5 = sshll.u32 (!%p140_p2), %s1558_s13, 1  ;;  %vm257_vm0 = vcmask (!%p140_p2), 1047552   ;;  %vm564_vm3 = vcmask (!%p140_p2), 974848   ;;  %v576_v55 = vlaneseq (!%p140_p2) }
   0x6   : > { %143 = sbr.rel (%p140_p2) target bundleno = 1315 (0x523), region = 32  ;;  %v1885_v1 = vld [vmem:[%s2410_s1] sm:$0xff] (!%p140_p2)   ;;  %1671 = vmatprep.subr.bf16.mxu0 (!%p140_p2), %v1884_v0  ;;  %v1888_v4 = vld [vmem:[%s2410_s1 + $0x8] sm:$0xff] (!%p140_p2)   ;;  %v1891_v7 = vld [vmem:[%s2410_s1 + $0x10] sm:$0xff] (!%p140_p2)   ;;  %p165_p3 = scmp.lt.s32.totalorder (!%p140_p2), %s1563_s5, 3  ;;  %v1979_v54 = vmov (!%p140_p2), 0.0  }
   0x7   : > { %1672 = vmatpush3.bf16.msra.mxu0 (!%p140_p2), %v1885_v1  ;;  %v1887_v3 = vld [vmem:[%s2410_s1 + $0x80] sm:$0xff] (!%p140_p2)   ;;  %v1890_v6 = vld [vmem:[%s2410_s1 + $0x88] sm:$0xff] (!%p140_p2)   ;;  %v1892_v8 = vld [vmem:[%s2410_s1 + $0x58] sm:$0xff] (!%p140_p2)   ;;  %vm258_vm1 = vsmask.f32 (!%p140_p2), 7424  ;;  %v2106_v56 = vshrl.u32 (!%p140_p2), %v576_v55, 7 }
   0x8   : > { %1673 = vmatprep.subr.bf16.mxu0 (!%p140_p2), %v1886_v2  ;;  %1780 = vmatprep.subr.bf16.mxu1 (!%p140_p2), %v1887_v3  ;;  %v1893_v9 = vld [vmem:[%s2410_s1 + $0x90] sm:$0xff] (!%p140_p2)   ;;  %v1894_v10 = vld [vmem:[%s2410_s1 + $0x18] sm:$0xff] (!%p140_p2)   ;;  %v1895_v11 = vld [vmem:[%s2410_s1 + $0x60] sm:$0xff] (!%p140_p2)   ;;  %565 = vst.msk [vmem:[#allocation2] sm:$0x1] (!%p140_p2), %vm564_vm3, %v1979_v54  ;;  %vm566_vm4 = vcmask (!%p140_p2), 982016  }
   0x9   : > { %1781 = vmatpush3.bf16.msra.mxu1 (!%p140_p2), %v1887_v3  ;;  %v1896_v12 = vld [vmem:[%s2410_s1 + $0x98] sm:$0xff] (!%p140_p2)   ;;  %v1897_v13 = vld [vmem:[%s2410_s1 + $0x20] sm:$0xff] (!%p140_p2)   ;;  %v1898_v15 = vld [vmem:[%s2410_s1 + $0x68] sm:$0xff] (!%p140_p2)   ;;  %570 = vst.msk [vmem:[#allocation2 + $0x10] sm:$0x1] (!%p140_p2), %vm564_vm3, %v1979_v54  ;;  %v578_v58 = vsub.s32 (!%p140_p2), 0, %v2106_v56 }
   0xa   : > { %1782 = vmatprep.subr.bf16.mxu1 (!%p140_p2), %v1890_v6  ;;  %v1899_v14 = vld [vmem:[%s2410_s1 + $0xa0] sm:$0xff] (!%p140_p2)   ;;  %v1900_v16 = vld [vmem:[%s2410_s1 + $0x28] sm:$0xff] (!%p140_p2)   ;;  %v1901_v18 = vld [vmem:[%s2410_s1 + $0x70] sm:$0xff] (!%p140_p2)   ;;  %638 = vst.msk [vmem:[#allocation2 + $0x11] sm:$0x1] (!%p140_p2), %vm564_vm3, %v1979_v54  ;;  %v583_v59 = vsub.s32 (!%p140_p2), 3, %v2106_v56 }
   0xb   : > { %1674 = vmatpush3.bf16.msra.mxu0 (!%p140_p2), %v1888_v4  ;;  %v1902_v17 = vld [vmem:[%s2410_s1 + $0xa8] sm:$0xff] (!%p140_p2)   ;;  %v1903_v19 = vld [vmem:[%s2410_s1 + $0x30] sm:$0xff] (!%p140_p2)   ;;  %v1904_v20 = vld [vmem:[%s2410_s1 + $0x78] sm:$0xff] (!%p140_p2)   ;;  %644 = vst.msk [vmem:[#allocation2 + $0x21] sm:$0x1] (!%p140_p2), %vm564_vm3, %v1979_v54  ;;  %v589_v60 = vsub.s32 (!%p140_p2), 6, %v2106_v56 }
   0xc   : > { %1675 = vmatprep.subr.bf16.mxu0 (!%p140_p2), %v1889_v5  ;;  %v1905_v21 = vld [vmem:[%s2410_s1 + $0xb0] sm:$0xff] (!%p140_p2)   ;;  %v1906_v26 = vld [vmem:[%s2410_s1 + $0x38] sm:$0xff] (!%p140_p2)   ;;  %vm2086_vm2 = vmand (!%p140_p2), %vm257_vm0, %vm258_vm1  ;;  %1043 = vst [vmem:[#allocation3] sm:$0x1] (!%p140_p2), %v1979_v54  ;;  %vm568_vm5 = vcmask (!%p140_p2), 980992   ;;  %vm639_vm6 = vcmask (!%p140_p2), 982023  }
   0xd   : > { %1783 = vmatpush3.bf16.msra.mxu1 %v1890_v6  ;;  %s2416_s5 = smov (!%p165_p3, %s1563_s5), 3  ;;  %v1913_v32 = vld [vmem:[%s2410_s1 + $0xb8] sm:$0xff]   ;;  %1101 = vst [vmem:[#allocation3 + $0x9] sm:$0x1] %v1979_v54  ;;  %v2111_v57 = vld [vmem:[%s2411_s2] sm:$0xff]  ;;  %v1919_v3 = vld [vmem:[%s2410_s1 + $0x108] sm:$0xff]  }
   0xe   : > { %1784 = vmatprep.subr.bf16.mxu1 %v1893_v9  ;;  %s1670_s25 = sshll.u32 %s2416_s5, 4  ;;  %v2119_v61 = vrot.slane %v2111_v57, %v578_v58  ;;  %v2124_v62 = vrot.slane %v2111_v57, %v583_v59  ;;  %v2129_v63 = vrot.slane %v2111_v57, %v589_v60  ;;  %v1916_v0 = vld [vmem:[%s2410_s1 + $0x100] sm:$0xff]   ;;  %v1921_v4 = vld [vmem:[%s2410_s1 + $0x148] sm:$0xff]   ;;  %v1922_v6 = vld [vmem:[%s2410_s1 + $0x110] sm:$0xff]   ;;  %vm642_vm7 = vcmask 979968   ;;  %s1981_s18 = smov 120  }
   0xf   : > { %1676 = vmatpush3.bf16.msra.mxu0 %v1891_v7  ;;  %s169_s8 = scalar_lea.vmem %s2409_s0, %s1670_s25  ;;  %v1917_v1 = vld [vmem:[%s2410_s1 + $0xc0] sm:$0xff]   ;;  %v1920_v5 = vld [vmem:[%s2410_s1 + $0xc8] sm:$0xff]   ;;  %v1924_v7 = vld [vmem:[%s2410_s1 + $0x150] sm:$0xff]   ;;  %vm868_vm8 = vcmask 1043456   ;;  %vm1980_vm9 = vmmov 0   ;;  %s1982_s19 = smov 112  }
  0x10   : > { %1677 = vmatprep.subr.bf16.mxu0 %v1892_v8  ;;  %v1909_v22 = vld [vmem:[%s169_s8 + $0x14] ss:$8 sps:$4 sm:$0xff]   ;;  %v1907_v23 = vld [vmem:[%s169_s8 + $0x4] ss:$8 sps:$4 sm:$0xff]   ;;  %v1911_v24 = vld [vmem:[%s169_s8] ss:$8 sps:$4 sm:$0xff]  }
  0x11   : > { %1785 = vmatpush3.bf16.msra.mxu1 %v1893_v9  ;;  %v1912_v25 = vld [vmem:[%s169_s8 + $0x10] ss:$8 sps:$4 sm:$0xff]   ;;  %v235_v27 = vshll.u32 %v1909_v22, 16  ;;  %v245_v30 = vshrl.u32 %v1909_v22, 16  ;;  %v1914_v33 = vld [vmem:[%s169_s8] ss:$8 sps:$4 sm:$0xff]  }
  0x12   : > { %1786 = vmatprep.subr.bf16.mxu1 %v1896_v12  ;;  %v231_v29 = vshll.u32 %v1912_v25, 16  ;;  %v1915_v35 = vld [vmem:[%s169_s8 + $0x10] ss:$8 sps:$4 sm:$0xff]   ;;  %v200_v37 = vshll.u32 %v1914_v33, 16  ;;  %v198_v42 = vshrl.u32 %v1914_v33, 16  ;;  %v242_v43 = vshrl.u32 %v1912_v25, 16 }
  0x13   : > { %1678 = vmatpush3.bf16.msra.mxu0 %v1894_v10  ;;  %v237_v31 = vrot.slane %v235_v27, 1  ;;  %v224_v39 = vshrl.u32 %v1915_v35, 16  ;;  %v226_v40 = vshll.u32 %v1915_v35, 16  ;;  %v1918_v2 = vld [vmem:[%s2410_s1 + $0x140] sm:$0xff]   ;;  %v1923_v8 = vld [vmem:[%s2410_s1 + $0xd0] sm:$0xff]   ;;  %v1925_v9 = vld [vmem:[%s2410_s1 + $0x118] sm:$0xff]  }
  0x14   : > { %1679 = vmatprep.subr.bf16.mxu0 %v1895_v11  ;;  %v233_v34 = vrot.slane %v231_v29, 1  ;;  %v202_v44 = vrot.slane %v200_v37, 1  ;;  %v1927_v10 = vld [vmem:[%s2410_s1 + $0x158] sm:$0xff]   ;;  %vm636_vm10 = vcmask 916480   ;;  %vm864_vm11 = vcmask 850944   ;;  %s1567_s21 = sshll.u32 %s2416_s5, 2 }
  0x15   : > { %1787 = vmatpush3.bf16.msra.mxu1 %v1896_v12  ;;  %v261_v36 = vsel %vm2086_vm2, %v1907_v23, %v237_v31  ;;  %v247_v41 = vor.u32 %v245_v30, %v237_v31  ;;  %v228_v45 = vrot.slane %v226_v40, 1  ;;  %v1926_v11 = vld [vmem:[%s2410_s1 + $0xd8] sm:$0xff]   ;;  %v1928_v12 = vld [vmem:[%s2410_s1 + $0x120] sm:$0xff]   ;;  %vm994_vm12 = vcmask 523264   ;;  %s175_s24 = scalar_lea.vmem %s2412_s3, %s1567_s21 }
  0x16   : > { %1788 = vmatprep.subr.bf16.mxu1 %v1899_v14  ;;  %492 = vmatprep.mubr.bf16.mxu0 %v261_v36  ;;  %v260_v38 = vsel %vm2086_vm2, %v1911_v24, %v233_v34  ;;  %v203_v47 = vor.u32 %v202_v44, %v198_v42  ;;  %v244_v50 = vor.u32 %v242_v43, %v233_v34  ;;  %v1578_v23 = vld [vmem:[%s2411_s2 + $0x20] ss:$0 sm:$0xff] }
  0x17   : > { %1680 = vmatpush3.bf16.msra.mxu0 %v1897_v13  ;;  %v229_v46 = vor.u32 %v228_v45, %v224_v39  ;;  %v1930_v13 = vld [vmem:[%s2410_s1 + $0x160] sm:$0xff]   ;;  %v595_v45 = vsub.s32 1, %v2106_v56 }
  0x18   : > { %1681 = vmatprep.subr.bf16.mxu0 %v1898_v15  ;;  %v1931_v15 = vld [vmem:[%s2410_s1 + $0x128] sm:$0xff]  }
  0x19   : > { %1789 = vmatpush3.bf16.msra.mxu1 %v1899_v14  ;;  %v239_v48 = vshll.u32 %v229_v46, 16  ;;  %v248_v49 = vshrl.u32 %v229_v46, 16  ;;  %v1929_v14 = vld [vmem:[%s2410_s1 + $0xe0] sm:$0xff]   ;;  %v600_v46 = vsub.s32 4, %v2106_v56 }
  0x1a   : > { %1790 = vmatprep.subr.bf16.mxu1 %v1902_v17 }
  0x1b   : > { %1682 = vmatpush3.bf16.msra.mxu0 %v1900_v16  ;;  %v241_v51 = vrot.slane %v239_v48, 1  ;;  %v1932_v16 = vld [vmem:[%s2410_s1 + $0xe8] sm:$0xff]   ;;  %v606_v48 = vsub.s32 7, %v2106_v56 }
  0x1c   : > { %1683 = vmatprep.subr.bf16.mxu0 %v1901_v18 }
  0x1d   : > { %1791 = vmatpush3.bf16.msra.mxu1 %v1902_v17  ;;  %v262_v52 = vsel %vm2086_vm2, %v203_v47, %v241_v51  ;;  %v250_v53 = vor.u32 %v248_v49, %v241_v51  ;;  %v612_v49 = vsub.s32 2, %v2106_v56  ;;  %v596_v51 = vrot.slane %v2111_v57, %v595_v45 }
  0x1e   : > { %1792 = vmatprep.subr.bf16.mxu1 %v1905_v21  ;;  %1796 = vmatprep.mubr.bf16.mxu1 %v262_v52  ;;  %v601_v52 = vrot.slane %v2111_v57, %v600_v46 }
  0x1f   : > { %1684 = vmatpush3.bf16.msra.mxu0 %v1903_v19  ;;  %v613_v55 = vrot.slane %v2111_v57, %v612_v49 }
  0x20   : > { %1685 = vmatprep.subr.bf16.mxu0 %v1904_v20 }
  0x21   : > { %1793 = vmatpush3.bf16.msra.mxu1 %v1905_v21 }
  0x22   : > { %1794 = vmatprep.subr.bf16.mxu1 %v1913_v32 }
  0x23   : > { %1686 = vmatpush3.bf16.msra.mxu0 %v1906_v26 }
  0x24   : > { %1709 = vmatprep.subr.bf16.mxu0 %v1916_v0 }
  0x25   : > { %1795 = vmatpush3.bf16.msra.mxu1 %v1913_v32 }
  0x26   : > { %493 = vmatmul.mubr.bf16.vlgmr.msra.gmra.mrb[0].mxu0 %v260_v38  ;;  %1800 = vmatprep.subr.bf16.mxu1 %v1979_v54 }
  0x27   : > { %500 = vmatprep.mubr.bf16.mxu0 %v247_v41  ;;  %1710 = vmatpush3.bf16.msra.mxu0 %v1917_v1 }
  0x28   : > { %1797 = vmatmul.mubr.bf16.vlgmr.msra.gmra.mrb[0].mxu1 %v250_v53  ;;  %1711 = vmatprep.subr.bf16.mxu0 %v1919_v3  ;;  %v607_v53 = vrot.slane %v2111_v57, %v606_v48 }
  0x29   : > { %1801 = vmatpush3.bf16.msra.mxu1 %v1918_v2  ;;  %1814 = vmatprep.mubr.msk.bf16.mxu1 %vm1980_vm9, %v1979_v54 }
  0x2a   : > { %1802 = vmatprep.subr.bf16.mxu1 %v1979_v54 }
  0x2b   : > { %1712 = vmatpush3.bf16.msra.mxu0 %v1920_v5 }
  0x2c   : > { %1713 = vmatprep.subr.bf16.mxu0 %v1922_v6 }
  0x2d   : > { %1803 = vmatpush3.bf16.msra.mxu1 %v1921_v4 }
  0x2e   : > { %501 = vmatmul.mubr.bf16.gmra.mrb[4].mxu0 %v244_v50  ;;  %1804 = vmatprep.subr.bf16.mxu1 %v1979_v54  ;;  %v617_v50 = vsub.s32 5, %v2106_v56 }
  0x2f   : > { %1714 = vmatpush3.bf16.msra.mxu0 %v1923_v8 }
  0x30   : > { %1715 = vmatprep.subr.bf16.mxu0 %v1925_v9  ;;  %v618_v0 = vrot.slane %v2111_v57, %v617_v50 }
  0x31   : > { %1805 = vmatpush3.bf16.msra.mxu1 %v1924_v7 }
  0x32   : > { %1806 = vmatprep.subr.bf16.mxu1 %v1979_v54 }
  0x33   : > { %1716 = vmatpush3.bf16.msra.mxu0 %v1926_v11 }
  0x34   : > { %1717 = vmatprep.subr.bf16.mxu0 %v1928_v12 }
  0x35   : > { %1807 = vmatpush3.bf16.msra.mxu1 %v1927_v10 }
  0x36   : > { %1808 = vmatprep.subr.bf16.mxu1 %v1979_v54 }
  0x37   : > { %1718 = vmatpush3.bf16.msra.mxu0 %v1929_v14 }
  0x38   : > { %1719 = vmatprep.subr.bf16.mxu0 %v1931_v15 }
  0x39   : > { %1809 = vmatpush3.bf16.msra.mxu1 %v1930_v13 }
  0x3a   : > { %1810 = vmatprep.subr.bf16.mxu1 %v1979_v54 }
  0x3b   : > { %1720 = vmatpush3.bf16.msra.mxu0 %v1932_v16 }
  0xf9   : > { %v1687_v17 = vpop.f32.mrb[0].mxu0 }
  0xfa   : > { %v1688_v18 = vpop.f32.mrb[1].mxu0 }
  0xfb   : > { %v1689_v19 = vadd.f32 %v1688_v18, %v1687_v17  ;;  %v1690_v20 = vpop.f32.mrb[2].mxu0  ;;  %v1798_v26 = vpop.f32.mrb[0].mxu1 }
  0xfc   : > { %v1691_v21 = vpop.f32.mrb[3].mxu0  ;;  %v543_v29 = vpop.f32.mrb[1].mxu1 }
  0xfd   : > { %v1692_v22 = vadd.f32 %v1691_v21, %v1690_v20  ;;  %v495_v24 = vadd.f32 %v1689_v19, %v1578_v23  ;;  %v1799_v33 = vpop.f32.mrb[2].mxu1  ;;  %v1933_v19 = vld [vmem:[%s2410_s1 + $0x168] sm:$0xff]   ;;  %v1934_v20 = vld [vmem:[%s2410_s1 + $0x130] sm:$0xff]  }
  0xfe   : > { %v546_v35 = vpop.f32.mrb[3].mxu1  ;;  %v1935_v21 = vld [vmem:[%s2410_s1 + $0xf0] sm:$0xff]   ;;  %1811 = vmatpush3.bf16.msra.mxu1 %v1933_v19  ;;  %1721 = vmatprep.subr.bf16.mxu0 %v1934_v20 }
  0xff   : > { %v498_v27 = vadd.f32 %v1692_v22, %v1578_v23  ;;  %v544_v32 = vadd.f32 %v543_v29, %v495_v24  ;;  %1812 = vmatprep.subr.bf16.mxu1 %v1979_v54  ;;  %1722 = vmatpush3.bf16.msra.mxu0 %v1935_v21 }
 0x101   : > { %v1693_v25 = vpop.f32.mrb[4].mxu0  ;;  %v558_v38 = vmax.f32 %v544_v32, 0.0  ;;  %v547_v39 = vadd.f32 %v546_v35, %v498_v27 }
 0x102   : > { %v1694_v28 = vpop.f32.mrb[5].mxu0 }
 0x103   : > { %v1695_v30 = vadd.f32 %v1694_v28, %v1693_v25  ;;  %v1696_v31 = vpop.f32.mrb[6].mxu0  ;;  %567 = vst.msk [vmem:[#allocation2 + $0x1] sm:$0xff] %vm566_vm4, %v558_v38  ;;  %v559_v42 = vmax.f32 %v547_v39, 0.0 }
 0x104   : > { %v1697_v34 = vpop.f32.mrb[7].mxu0 }
 0x105   : > { %v503_v36 = vadd.f32 %v1695_v30, %v1578_v23  ;;  %v1698_v37 = vadd.f32 %v1697_v34, %v1696_v31  ;;  %569 = vst.msk [vmem:[#allocation2 + $0x9] sm:$0x7f] %vm568_vm5, %v559_v42  ;;  %v1603_v30 = vld [vmem:[%s2411_s2 + $0x8] ss:$0 sm:$0xff]  ;;  %v1938_v34 = vld [vmem:[%s2410_s1 + $0xf8] sm:$0xff]  }
 0x106   : > { %640 = vst.msk [vmem:[#allocation2 + $0xb] sm:$0x80] %vm639_vm6, %v559_v42 }
 0x107   : > { %v552_v40 = vadd.f32 %v1798_v26, %v503_v36  ;;  %v506_v41 = vadd.f32 %v1698_v37, %v1578_v23  ;;  %v1937_v26 = vld [vmem:[%s2410_s1 + $0x138] sm:$0xff]  }
 0x108   : > { %1723 = vmatprep.subr.bf16.mxu0 %v1937_v26  ;;  %v1944_v26 = vld [vmem:[%s2410_s1 + $0x218] sm:$0xff]  }
 0x109   : > { %v560_v43 = vmax.f32 %v552_v40, 0.0  ;;  %v555_v44 = vadd.f32 %v1799_v33, %v506_v41  ;;  %1724 = vmatpush3.bf16.msra.mxu0 %v1938_v34  ;;  %v1953_v34 = vld [vmem:[%s2410_s1 + $0x230] sm:$0xff]  }
 0x10b   : > { %641 = vst.msk [vmem:[#allocation2 + $0x13] sm:$0xff] %vm566_vm4, %v560_v43  ;;  %v561_v47 = vmax.f32 %v555_v44, 0.0 }
 0x10c   : > { %v571_v1 = vld [vmem:[#allocation2] ss:$2 sm:$0xff]  ;;  %v573_v2 = vld [vmem:[#allocation2 + $0x1] ss:$2 sm:$0xff] }
 0x10d   : > { %643 = vst.msk [vmem:[#allocation2 + $0x1b] sm:$0x3f] %vm642_vm7, %v561_v47  ;;  %v575_v3 = vld [vmem:[#allocation2 + $0x2] ss:$2 sm:$0xff]  ;;  %v585_v4 = vmul.f32 %v2124_v62, %v573_v2  ;;  %v597_v6 = vmul.f32 %v596_v51, %v571_v1  ;;  %v602_v7 = vmul.f32 %v601_v52, %v573_v2  ;;  %v580_v8 = vmul.f32 %v2119_v61, %v571_v1 }
 0x10e   : > { %v591_v5 = vmul.f32 %v2129_v63, %v575_v3  ;;  %v608_v10 = vmul.f32 %v607_v53, %v575_v3  ;;  %v614_v14 = vmul.f32 %v613_v55, %v571_v1  ;;  %v619_v15 = vmul.f32 %v618_v0, %v573_v2 }
 0x10f   : > { %v603_v9 = vadd.f32 %v602_v7, %v597_v6  ;;  %v586_v29 = vadd.f32 %v585_v4, %v580_v8  ;;  %v625_v39 = vmul.f32 %v1603_v30, %v575_v3  ;;  %v1939_v6 = vld [vmem:[%s2410_s1 + $0x178] sm:$0xff]   ;;  %v1940_v7 = vld [vmem:[%s2410_s1 + $0x180] sm:$0xff]   ;;  %v1941_v8 = vld [vmem:[%s2410_s1 + $0x188] sm:$0xff]  }
 0x110   : > { %v620_v28 = vadd.f32 %v619_v15, %v614_v14 }
 0x111   : > { %v609_v22 = vadd.f32 %v608_v10, %v603_v9  ;;  %v592_v37 = vadd.f32 %v591_v5, %v586_v29  ;;  %v1943_v9 = vld [vmem:[%s2410_s1 + $0x1d8] sm:$0xff]   ;;  %v1942_v10 = vld [vmem:[%s2410_s1 + $0x190] sm:$0xff]   ;;  %v1948_v29 = vld [vmem:[%s2410_s1 + $0x1a0] sm:$0xff]  }
 0x112   : > { %v626_v41 = vadd.f32 %v625_v39, %v620_v28  ;;  %1744 = vmatprep.subr.bf16.mxu0 %v1943_v9  ;;  %v1947_v28 = vld [vmem:[%s2410_s1 + $0x220] sm:$0xff]  }
 0x113   : > { %v1958_v39 = vld [vmem:[%s2410_s1 + $0x200] sm:$0xff]  }
 0x114   : > { %v646_v11 = vld [vmem:[#allocation2 + $0x11] ss:$2 sm:$0xff]  ;;  %v648_v12 = vld [vmem:[#allocation2 + $0x12] ss:$2 sm:$0xff] }
 0x115   : > { %v650_v13 = vld [vmem:[#allocation2 + $0x13] ss:$2 sm:$0xff]  ;;  %v651_v57 = vmul.f32 %v646_v11, %v2119_v61  ;;  %v652_v16 = vmul.f32 %v648_v12, %v2124_v62  ;;  %v656_v18 = vmul.f32 %v646_v11, %v596_v51  ;;  %v657_v23 = vmul.f32 %v648_v12, %v601_v52 }
 0x116   : > { %v654_v17 = vmul.f32 %v650_v13, %v2129_v63  ;;  %v659_v61 = vmul.f32 %v650_v13, %v607_v53  ;;  %v661_v24 = vmul.f32 %v646_v11, %v613_v55  ;;  %v662_v62 = vmul.f32 %v648_v12, %v618_v0  ;;  %v1936_v63 = vld [vmem:[%s2410_s1 + $0x170] ss:$0 sps:$4 sm:$0xff]   ;;  %v1945_v11 = vld [vmem:[%s2410_s1 + $0x198] sm:$0xff]   ;;  %v1946_v12 = vld [vmem:[%s2410_s1 + $0x1e0] sm:$0xff]  }
 0x117   : > { %v653_v25 = vadd.f32 %v652_v16, %v651_v57  ;;  %v658_v27 = vadd.f32 %v657_v23, %v656_v18  ;;  %v870_v33 = vsel %vm868_vm8, %v1936_v63, 0  ;;  %v664_v36 = vmul.f32 %v1603_v30, %v650_v13  ;;  %v1604_v16 = vld [vmem:[%s2411_s2 + $0x28] ss:$0 sm:$0xff] }
 0x118   : > { %v663_v31 = vadd.f32 %v662_v62, %v661_v24  ;;  %1813 = vmatpush3.bf16.msra.mxu1 %v870_v33  ;;  %v1949_v30 = vld [vmem:[%s2410_s1 + $0x1e8] sm:$0xff]   ;;  %v1952_v33 = vld [vmem:[%s2410_s1 + $0x1f0] sm:$0xff]  }
 0x119   : > { %v655_v32 = vadd.f32 %v654_v17, %v653_v25  ;;  %v660_v35 = vadd.f32 %v659_v61, %v658_v27  ;;  %1818 = vmatprep.subr.bf16.mxu1 %v1979_v54 }
 0x11a   : > { %v665_v40 = vadd.f32 %v664_v36, %v663_v31  ;;  %v1950_v31 = vld [vmem:[%s2410_s1 + $0x228] sm:$0xff]   ;;  %v1955_v36 = vld [vmem:[%s2410_s1 + $0x1f8] sm:$0xff]  }
 0x11b   : > { %v1874_v38 = vpack.i.bf16 %v660_v35, %v609_v22  ;;  %v1954_v35 = vld [vmem:[%s2410_s1 + $0x1b0] sm:$0xff]  }
 0x11c   : > { %v1879_v42 = vpack.i.bf16 %v665_v40, %v626_v41  ;;  %v1959_v40 = vld [vmem:[%s2410_s1 + $0x240] sm:$0xff]  }
 0x11d   : > { %1875 = vrot.lane.b32.xlu0 %v1874_v38, %s1981_s18  ;;  %v1957_v38 = vld [vmem:[%s2410_s1 + $0x1b8] sm:$0xff]   ;;  %v1960_v41 = vld [vmem:[%s2410_s1 + $0x1c0] sm:$0xff]  }
 0x121   : > { %1880 = vrot.lane.b32.xlu0 %v1879_v42, %s1982_s19  ;;  %v1961_v42 = vld [vmem:[%s2410_s1 + $0x208] sm:$0xff]  }
 0x18f   : > { %v1876_v43 = vpop.permute.xlu0 %1875 }
 0x190   : > { %v1878_v44 = vunpack.i.h.bf16 %v1876_v43  ;;  %v1877_v47 = vunpack.i.l.bf16 %v1876_v43  ;;  %v1962_v43 = vld [vmem:[%s2410_s1 + $0x248] sm:$0xff]  }
 0x192   : > { %v674_v51 = vsel %vm566_vm4, %v655_v32, %v1878_v44  ;;  %v635_v52 = vsel %vm566_vm4, %v592_v37, %v1877_v47  ;;  %v1951_v32 = vld [vmem:[%s2410_s1 + $0x1a8] sm:$0xff]   ;;  %v1956_v37 = vld [vmem:[%s2410_s1 + $0x238] sm:$0xff]  }
 0x193   : > { %v676_v53 = vpack.c.bf16 %v674_v51, %v635_v52  ;;  %v1881_v55 = vpop.permute.xlu0 %1880  ;;  %v1965_v51 = vld [vmem:[%s2410_s1 + $0x250] sm:$0xff]  }
 0x194   : > { %v1883_v0 = vunpack.i.h.bf16 %v1881_v55  ;;  %v1882_v1 = vunpack.i.l.bf16 %v1881_v55  ;;  %v1966_v52 = vld [vmem:[%s2410_s1 + $0x1d0] sm:$0xff]  }
 0x196   : > { %v678_v2 = vpack.c.bf16 %v1883_v0, %v1882_v1  ;;  %v637_v3 = vsel %vm636_vm10, %v1877_v47, %v1882_v1  ;;  %v675_v4 = vsel %vm636_vm10, %v1878_v44, %v1883_v0  ;;  %v1963_v44 = vld [vmem:[%s2410_s1 + $0x1c8] sm:$0xff]   ;;  %v1964_v47 = vld [vmem:[%s2410_s1 + $0x210] sm:$0xff]  }
 0x197   : > { %v677_v5 = vpack.c.bf16 %v675_v4, %v637_v3 }
 0x198   : > { %1815 = vmatmul.mubr.msk.bf16.vlgmr.msra.gmra.mrb[4].mxu1 %vm864_vm11, %v678_v2 }
 0x199   : > { %904 = vmatprep.mubr.bf16.mxu0 %v677_v5  ;;  %1826 = vmatprep.mubr.msk.bf16.mxu1 %vm1980_vm9, %v1979_v54 }
 0x19a   : > { %905 = vmatmul.mubr.bf16.vlgmr.msra.gmra.mrb[8].mxu0 %v676_v53  ;;  %1819 = vmatpush3.bf16.msra.mxu1 %v1939_v6  ;;  %v1629_v53 = vld [vmem:[%s2411_s2 + $0x30] ss:$0 sm:$0xff] }
 0x19b   : > { %1820 = vmatprep.subr.bf16.mxu1 %v1979_v54  ;;  %1745 = vmatpush3.bf16.msra.mxu0 %v1945_v11 }
 0x19c   : > { %1746 = vmatprep.subr.bf16.mxu0 %v1946_v12 }
 0x19e   : > { %1821 = vmatpush3.bf16.msra.mxu1 %v1940_v7  ;;  %v1041_v7 = vld [vmem:[%s2411_s2 + $0x10] sm:$0xff] }
 0x19f   : > { %1822 = vmatprep.subr.bf16.mxu1 %v1979_v54  ;;  %1747 = vmatpush3.bf16.msra.mxu0 %v1948_v29  ;;  %v1075_v9 = vrot.slane %v1041_v7, %v600_v46  ;;  %v1092_v11 = vrot.slane %v1041_v7, %v617_v50  ;;  %v1053_v12 = vrot.slane %v1041_v7, %v578_v58 }
 0x1a0   : > { %1748 = vmatprep.subr.bf16.mxu0 %v1949_v30 }
 0x1a2   : > { %1823 = vmatpush3.bf16.msra.mxu1 %v1941_v8  ;;  %v1070_v8 = vrot.slane %v1041_v7, %v595_v45 }
 0x1a3   : > { %1824 = vmatprep.subr.bf16.mxu1 %v1979_v54  ;;  %1749 = vmatpush3.bf16.msra.mxu0 %v1951_v32 }
 0x1a4   : > { %1750 = vmatprep.subr.bf16.mxu0 %v1952_v33 }
 0x1a6   : > { %1825 = vmatpush3.bf16.msra.mxu1 %v1942_v10  ;;  %v1087_v10 = vrot.slane %v1041_v7, %v612_v49  ;;  %v1064_v49 = vrot.slane %v1041_v7, %v589_v60 }
 0x1a7   : > { %1830 = vmatprep.subr.bf16.mxu1 %v1979_v54  ;;  %1751 = vmatpush3.bf16.msra.mxu0 %v1954_v35 }
 0x1a8   : > { %1752 = vmatprep.subr.bf16.mxu0 %v1955_v36 }
 0x1ab   : > { %1753 = vmatpush3.bf16.msra.mxu0 %v1957_v38 }
 0x1ac   : > { %1754 = vmatprep.subr.bf16.mxu0 %v1958_v39 }
 0x1af   : > { %1755 = vmatpush3.bf16.msra.mxu0 %v1960_v41 }
 0x1b0   : > { %1756 = vmatprep.subr.bf16.mxu0 %v1961_v42 }
 0x1b3   : > { %1757 = vmatpush3.bf16.msra.mxu0 %v1963_v44 }
 0x1b4   : > { %1758 = vmatprep.subr.bf16.mxu0 %v1964_v47 }
 0x1b7   : > { %1759 = vmatpush3.bf16.msra.mxu0 %v1966_v52 }
 0x1b8   : > { %1850 = vmatprep.subr.bf16.mxu0 %v1979_v54 }
 0x26b   : > { %v947_v13 = vpop.f32.mrb[4].mxu1 }
 0x26c   : > { %v1816_v14 = vpop.f32.mrb[5].mxu1 }
 0x26d   : > { %v1725_v15 = vpop.f32.mrb[8].mxu0  ;;  %v950_v57 = vpop.f32.mrb[6].mxu1  ;;  %v1081_v14 = vrot.slane %v1041_v7, %v606_v48 }
 0x26e   : > { %v1726_v17 = vpop.f32.mrb[9].mxu0  ;;  %v1817_v18 = vpop.f32.mrb[7].mxu1 }
 0x26f   : > { %v1727_v19 = vadd.f32 %v1726_v17, %v1725_v15  ;;  %v1728_v20 = vpop.f32.mrb[10].mxu0 }
 0x270   : > { %v1729_v21 = vpop.f32.mrb[11].mxu0 }
 0x271   : > { %v907_v22 = vadd.f32 %v1727_v19, %v1604_v16  ;;  %v1730_v23 = vadd.f32 %v1729_v21, %v1728_v20 }
 0x273   : > { %v948_v61 = vadd.f32 %v947_v13, %v907_v22  ;;  %v910_v24 = vadd.f32 %v1730_v23, %v1604_v16  ;;  %v1058_v13 = vrot.slane %v1041_v7, %v583_v59  ;;  %v1636_v7 = vld [vmem:[%s2411_s2 + $0x38] ss:$0 sm:$0xff] }
 0x275   : > { %v951_v62 = vadd.f32 %v950_v57, %v910_v24  ;;  %v954_v25 = vmax.f32 %v948_v61, 0.0 }
 0x277   : > { %v955_v63 = vmax.f32 %v951_v62, 0.0  ;;  %v1635_v62 = vld [vmem:[%s2411_s2 + $0x18] ss:$0 sm:$0xff] }
 0x279   : > { %v956_v27 = vpack.c.bf16 %v955_v63, %v954_v25 }
 0x27b   : > { %1827 = vmatmul.mubr.msk.bf16.vlgmr.msra.gmra.mrb[8].mxu1 %vm994_vm12, %v956_v27 }
 0x27c   : > { %1831 = vmatpush3.bf16.msra.mxu1 %v1944_v26  ;;  %1846 = vmatprep.mubr.msk.bf16.mxu1 %vm1980_vm9, %v1979_v54 }
 0x27d   : > { %1832 = vmatprep.subr.bf16.mxu1 %v1979_v54 }
 0x280   : > { %1833 = vmatpush3.bf16.msra.mxu1 %v1947_v28 }
 0x281   : > { %1834 = vmatprep.subr.bf16.mxu1 %v1979_v54 }
 0x284   : > { %1835 = vmatpush3.bf16.msra.mxu1 %v1950_v31 }
 0x285   : > { %1836 = vmatprep.subr.bf16.mxu1 %v1979_v54 }
 0x288   : > { %1837 = vmatpush3.bf16.msra.mxu1 %v1953_v34 }
 0x289   : > { %1838 = vmatprep.subr.bf16.mxu1 %v1979_v54 }
 0x28c   : > { %1839 = vmatpush3.bf16.msra.mxu1 %v1956_v37 }
 0x28d   : > { %1840 = vmatprep.subr.bf16.mxu1 %v1979_v54 }
 0x290   : > { %1841 = vmatpush3.bf16.msra.mxu1 %v1959_v40 }
 0x291   : > { %1842 = vmatprep.subr.bf16.mxu1 %v1979_v54 }
 0x294   : > { %1843 = vmatpush3.bf16.msra.mxu1 %v1962_v43 }
 0x295   : > { %1844 = vmatprep.subr.bf16.mxu1 %v1979_v54 }
 0x298   : > { %1845 = vmatpush3.bf16.msra.mxu1 %v1965_v51 }
 0x34e   : > { %v1032_v55 = vpop.f32.mrb[8].mxu1 }
 0x34f   : > { %v1033_v0 = vadd.f32 %v1629_v53, %v1032_v55  ;;  %v1828_v1 = vpop.f32.mrb[9].mxu1 }
 0x350   : > { %v1035_v2 = vpop.f32.mrb[10].mxu1  ;;  %v1969_v1 = vld [vmem:[%s2410_s1 + $0x268] sm:$0xff]  }
 0x351   : > { %v1039_v3 = vmax.f32 %v1033_v0, 0.0  ;;  %v1036_v4 = vadd.f32 %v1629_v53, %v1035_v2  ;;  %v1829_v5 = vpop.f32.mrb[11].mxu1  ;;  %v1967_v53 = vld [vmem:[%s2410_s1 + $0x258] sm:$0xff]   ;;  %v1968_v0 = vld [vmem:[%s2410_s1 + $0x260] sm:$0xff]   ;;  %v1970_v2 = vld [vmem:[%s2410_s1 + $0x270] sm:$0xff]  }
 0x353   : > { %1044 = vst [vmem:[#allocation3 + $0x1] sm:$0xff] %v1039_v3  ;;  %v1040_v6 = vmax.f32 %v1036_v4, 0.0 }
 0x355   : > { %1102 = vst [vmem:[#allocation3 + $0xa] sm:$0xff] %v1040_v6 }
 0x35a   : > { %v1045_v15 = vld [vmem:[#allocation3] ss:$2 sm:$0xf]  ;;  %v1047_v45 = vld [vmem:[#allocation3 + $0x1] ss:$2 sm:$0xf] }
 0x35b   : > { %v1049_v57 = vld [vmem:[#allocation3 + $0x2] ss:$2 sm:$0xf]  ;;  %v1071_v16 = vmul.f32 %v1070_v8, %v1045_v15  ;;  %v1076_v46 = vmul.f32 %v1075_v9, %v1047_v45  ;;  %v1088_v17 = vmul.f32 %v1087_v10, %v1045_v15  ;;  %v1093_v18 = vmul.f32 %v1092_v11, %v1047_v45 }
 0x35c   : > { %v1082_v50 = vmul.f32 %v1081_v14, %v1049_v57  ;;  %v1104_v19 = vld [vmem:[#allocation3 + $0x9] ss:$2 sm:$0xf]  ;;  %v1106_v20 = vld [vmem:[#allocation3 + $0xa] ss:$2 sm:$0xf]  ;;  %v1054_v58 = vmul.f32 %v1053_v12, %v1045_v15  ;;  %v1059_v21 = vmul.f32 %v1058_v13, %v1047_v45  ;;  %v1065_v29 = vmul.f32 %v1064_v49, %v1049_v57 }
 0x35d   : > { %v1077_v22 = vadd.f32 %v1076_v46, %v1071_v16  ;;  %v1108_v59 = vld [vmem:[#allocation3 + $0xb] ss:$2 sm:$0xf]  ;;  %v1114_v23 = vmul.f32 %v1104_v19, %v1070_v8  ;;  %v1115_v61 = vmul.f32 %v1106_v20, %v1075_v9  ;;  %v1094_v48 = vadd.f32 %v1093_v18, %v1088_v17 }
 0x35e   : > { %v1117_v24 = vmul.f32 %v1108_v59, %v1081_v14  ;;  %v1119_v25 = vmul.f32 %v1104_v19, %v1087_v10  ;;  %v1120_v63 = vmul.f32 %v1106_v20, %v1092_v11  ;;  %v1122_v60 = vmul.f32 %v1635_v62, %v1108_v59 }
 0x35f   : > { %v1083_v26 = vadd.f32 %v1082_v50, %v1077_v22  ;;  %v1116_v56 = vadd.f32 %v1115_v61, %v1114_v23  ;;  %v1060_v27 = vadd.f32 %v1059_v21, %v1054_v58  ;;  %v1109_v30 = vmul.f32 %v1104_v19, %v1053_v12 }
 0x360   : > { %v1121_v28 = vadd.f32 %v1120_v63, %v1119_v25  ;;  %v1110_v31 = vmul.f32 %v1106_v20, %v1058_v13  ;;  %v1099_v33 = vmul.f32 %v1635_v62, %v1049_v57  ;;  %v1112_v37 = vmul.f32 %v1108_v59, %v1064_v49 }
 0x361   : > { %v1118_v32 = vadd.f32 %v1117_v24, %v1116_v56  ;;  %v1066_v35 = vadd.f32 %v1065_v29, %v1060_v27 }
 0x362   : > { %v1123_v34 = vadd.f32 %v1122_v60, %v1121_v28  ;;  %v1111_v36 = vadd.f32 %v1110_v31, %v1109_v30  ;;  %v1100_v39 = vadd.f32 %v1099_v33, %v1094_v48 }
 0x363   : > { %v1128_v38 = vrot.slane %v1118_v32, 4 }
 0x364   : > { %v1129_v40 = vrot.slane %v1123_v34, 4  ;;  %v1113_v41 = vadd.f32 %v1112_v37, %v1111_v36 }
 0x365   : > { %v1134_v42 = vsel %vm868_vm8, %v1083_v26, %v1128_v38 }
 0x366   : > { %v1137_v43 = vpack.c.bf16 %v1134_v42, %v1134_v42  ;;  %v1135_v44 = vsel %vm868_vm8, %v1100_v39, %v1129_v40  ;;  %v1127_v47 = vrot.slane %v1113_v41, 4 }
 0x367   : > { %v1138_v51 = vpack.c.bf16 %v1135_v44, %v1135_v44 }
 0x368   : > { %1368 = vmatprep.mubr.bf16.mxu0 %v1137_v43  ;;  %v1133_v52 = vsel %vm868_vm8, %v1066_v35, %v1127_v47 }
 0x369   : > { %1847 = vmatmul.mubr.bf16.vlgmr.msra.gmra.mrb[12].mxu1 %v1138_v51  ;;  %v1136_v55 = vpack.c.bf16 %v1133_v52, %v1133_v52 }
 0x36b   : > { %1369 = vmatmul.mubr.bf16.vlgmr.msra.gmra.mrb[12].mxu0 %v1136_v55 }
 0x36c   : > { %1851 = vmatpush3.bf16.msra.mxu0 %v1967_v53  ;;  %1858 = vmatprep.mubr.msk.bf16.mxu0 %vm1980_vm9, %v1979_v54 }
 0x36d   : > { %1852 = vmatprep.subr.bf16.mxu0 %v1979_v54 }
 0x370   : > { %1853 = vmatpush3.bf16.msra.mxu0 %v1968_v0 }
 0x371   : > { %1854 = vmatprep.subr.bf16.mxu0 %v1979_v54 }
 0x374   : > { %1855 = vmatpush3.bf16.msra.mxu0 %v1969_v1 }
 0x375   : > { %1856 = vmatprep.subr.bf16.mxu0 %v1979_v54  ;;  %v1661_v54 = vld [vmem:[%s2411_s2 + $0x40] ss:$0 sm:$0xff] }
 0x378   : > { %1857 = vmatpush3.bf16.msra.mxu0 %v1970_v2 }
 0x43c   : > { %v1410_v3 = vpop.f32.mrb[12].mxu1 }
 0x43d   : > { %v1848_v4 = vpop.f32.mrb[13].mxu1 }
 0x43e   : > { %v1760_v5 = vpop.f32.mrb[12].mxu0  ;;  %v1413_v6 = vpop.f32.mrb[14].mxu1 }
 0x43f   : > { %v1761_v8 = vpop.f32.mrb[13].mxu0  ;;  %v1849_v9 = vpop.f32.mrb[15].mxu1 }
 0x440   : > { %v1762_v10 = vadd.f32 %v1761_v8, %v1760_v5  ;;  %v1763_v11 = vpop.f32.mrb[14].mxu0 }
 0x441   : > { %v1764_v12 = vpop.f32.mrb[15].mxu0 }
 0x442   : > { %v1371_v13 = vadd.f32 %v1762_v10, %v1636_v7 }
 0x444   : > { %v1411_v14 = vadd.f32 %v1410_v3, %v1371_v13 }
 0x446   : > { %v1416_v15 = vmax.f32 %v1411_v14, 0.0 }
 0x448   : > { %v1417_v45 = vpack.c.bf16 %v1416_v15, %v1416_v15 }
 0x44a   : > { %1859 = vmatmul.mubr.msk.bf16.vlgmr.msra.gmra.mrb[16].mxu0 %vm994_vm12, %v1417_v45 }
 0x51d   : > { %v1492_v57 = vpop.f32.mrb[16].mxu0 }
 0x51e   : > { %v1493_v16 = vadd.f32 %v1661_v54, %v1492_v57  ;;  %v1860_v46 = vpop.f32.mrb[17].mxu0 }
 0x51f   : > { %v1495_v17 = vpop.f32.mrb[18].mxu0 }
 0x520   : > { %v1498_v18 = vmax.f32 %v1493_v16, 0.0  ;;  %v1861_v49 = vpop.f32.mrb[19].mxu0 }
 0x522   : > { %1499 = vst [vmem:[%s175_s24] sm:$0xff] %v1498_v18  }
 0x523 PF: > { %s13_s12 = sadd.s32 1, %s1977_s12  }
 0x524   : > { %p10_p4 = scmp.ge.s32.totalorder %s13_s12, 4  }
 0x526   :  { %12 = sbr.rel (!%p10_p4) target bundleno = 1 (0x1), region = 74 }

</bundles_post_ra>
